<compile_context>
chip_gen: v7x
topology: tpu7x:2x2x1
jax: 0.10.0
libtpu: 0.0.40
codegen_flags: <defaults>
</compile_context>

<pallas_src>
import functools

import numpy as np
import jax
import jax.numpy as jnp
from jax import lax
from jax.experimental import pallas as pl
from jax.experimental.pallas import tpu as pltpu

# ------------------------- config (small, deterministic) -------------------------
BATCH = 2
SEQ = 8                  # L, must be divisible by 4
NUM_FEATURES = 8         # "51" in the original module
HIDDEN = 128             # llama hidden size (1024 in the original)
NUM_HEADS = 4
HEAD_DIM = HIDDEN // NUM_HEADS
INTERMEDIATE = 256       # llama MLP intermediate size
NUM_LAYERS = 4           # self.llama.layers[:4]
D_FF = 32                # slice of hidden fed to out_layer (128 in the original)
RMS_EPS = 1e-6
ROPE_THETA = 10000.0
NEG_INF = -1e30          # additive mask value; softmax math stays f32
PACK = 128               # lane-dense packed output width (dec | alpha | score | pad)

# Budget against v7x's 64 MiB physical VMEM (weights here total ~1.6 MiB bf16, so the
# fully-resident variant fits every generation; at the original 1024-hidden config
# keep per-layer streaming on v7x instead).
VMEM_LIMIT_BYTES = 48 * 1024 * 1024


# ------------------------------ in-kernel helpers ------------------------------
def _rms(x, w, eps):
    # f32 RMSNorm over the last axis (VPU/EUP work stays f32).
    var = jnp.mean(x * x, axis=-1, keepdims=True)
    return x * lax.rsqrt(var + eps) * w


# ------------------------------ fused model kernel ------------------------------
def _fused_kernel(h_ref, ln1_ref, wqkv_ref, wo_ref, ln2_ref, wgu_ref, wdown_ref,
                  cos_ref, sin_ref, mask_ref, fnw_ref, outw_ref, outb_ref,
                  xn_ref, std_ref, mean_ref, o_ref,
                  *, num_heads, head_dim, hidden, inter, d_ff, d, eps):
    l = pl.program_id(0)
    last = pl.num_programs(0) - 1

    @pl.when(l == 0)
    def _():
        o_ref[...] = h_ref[...]                         # seed the residual accumulator

    x = o_ref[...]                                      # (R, H) f32 residual, R = B*L

    # ---- attention: rmsnorm -> fused QKV(+rot) -> RoPE -> masked attn -> per-head Wo
    xn = _rms(x, ln1_ref[l], eps)
    qkv = jnp.dot(xn.astype(jnp.bfloat16), wqkv_ref[l],
                  preferred_element_type=jnp.float32)   # (R, 5H): q|k|v|q_rot|k_rot
    q = qkv[:, :hidden]
    k = qkv[:, hidden:2 * hidden]
    v = qkv[:, 2 * hidden:3 * hidden]
    q_rot = qkv[:, 3 * hidden:4 * hidden]               # x @ (Wq @ R)  (rotate_half folded)
    k_rot = qkv[:, 4 * hidden:]

    cos = cos_ref[...]                                  # (R, H) trace-time constants
    sin = sin_ref[...]
    scale = 1.0 / (head_dim ** 0.5)
    q = (q * cos + q_rot * sin) * scale                 # fold attention scale into q
    k = k * cos + k_rot * sin

    mask = mask_ref[...]                                # (R, R) block-diag causal, f32
    wo_l = wo_ref[l]                                    # (H, H) bf16
    attn = jnp.zeros_like(x)
    for h_i in range(num_heads):                        # static unroll over heads
        sl = slice(h_i * head_dim, (h_i + 1) * head_dim)
        qh = q[:, sl].astype(jnp.bfloat16)
        kh = k[:, sl].astype(jnp.bfloat16)
        vh = v[:, sl].astype(jnp.bfloat16)
        # contract last dims directly -> no in-kernel transpose of k
        s = lax.dot_general(qh, kh, (((1,), (1,)), ((), ())),
                            preferred_element_type=jnp.float32)
        s = s + mask
        m = jnp.max(s, axis=-1, keepdims=True)
        p = jnp.exp(s - m)
        p = p * pl.reciprocal(jnp.sum(p, axis=-1, keepdims=True), approx=True)
        ctx_h = jnp.dot(p.astype(jnp.bfloat16), vh,
                        preferred_element_type=jnp.float32)
        # per-head o_proj accumulation (avoids the lane concatenate)
        attn = attn + jnp.dot(ctx_h.astype(jnp.bfloat16), wo_l[sl, :],
                              preferred_element_type=jnp.float32)
    x = x + attn

    # ---- MLP: rmsnorm -> fused gate/up -> SwiGLU (f32) -> down + residual
    xn = _rms(x, ln2_ref[l], eps)
    gu = jnp.dot(xn.astype(jnp.bfloat16), wgu_ref[l],
                 preferred_element_type=jnp.float32)    # (R, 2I)
    g = gu[:, :inter]
    u = gu[:, inter:]
    act = g * jax.nn.sigmoid(g) * u                     # SiLU(gate) * up, f32
    mlp = jnp.dot(act.astype(jnp.bfloat16), wdown_ref[l],
                  preferred_element_type=jnp.float32)
    x = x + mlp

    @pl.when(l < last)
    def _():
        o_ref[...] = x                                  # keep residual VMEM-resident

    @pl.when(l == last)
    def _():
        # fused epilogue: final RMSNorm -> d_ff slice -> out_layer -> de-norm -> MSE
        hn = _rms(x, fnw_ref[...], eps)
        feats = hn[:, :d_ff].astype(jnp.bfloat16)
        dec = jnp.dot(feats, outw_ref[...], preferred_element_type=jnp.float32)
        dec = dec + outb_ref[...]
        dec = dec * std_ref[...] + mean_ref[...]        # de-normalize per segment
        diff = xn_ref[...] - dec                        # MSE(normalized x_enc, dec_out)
        a = diff * diff
        sc = jnp.mean(a, axis=-1, keepdims=True)
        pad = jnp.zeros((x.shape[0], o_ref.shape[-1] - (2 * d + 1)), jnp.float32)
        # one lane-dense 128-wide store: dec | alpha | score | padding
        o_ref[...] = jnp.concatenate([dec, a, sc, pad], axis=-1)


def run_fused_model(enc, params, cos_f, sin_f, mask, xn_flat, std_flat, mean_flat, d):
    R, H = enc.shape
    const2 = lambda l: (0, 0)
    const3 = lambda l: (0, 0, 0)
    kernel = functools.partial(
        _fused_kernel, num_heads=NUM_HEADS, head_dim=HEAD_DIM, hidden=H,
        inter=INTERMEDIATE, d_ff=D_FF, d=d, eps=RMS_EPS)
    return pl.pallas_call(
        kernel,
        out_shape=jax.ShapeDtypeStruct((R, PACK), jnp.float32),
        grid=(NUM_LAYERS,),
        in_specs=[
            pl.BlockSpec((R, H), const2),                               # embedded input (f32)
            pl.BlockSpec((NUM_LAYERS, 1, H), const3),                   # ln1 stack (f32)
            pl.BlockSpec((NUM_LAYERS, H, 5 * H), const3),               # Wq|Wk|Wv|WqR|WkR (bf16)
            pl.BlockSpec((NUM_LAYERS, H, H), const3),                   # Wo stack (bf16)
            pl.BlockSpec((NUM_LAYERS, 1, H), const3),                   # ln2 stack (f32)
            pl.BlockSpec((NUM_LAYERS, H, 2 * INTERMEDIATE), const3),    # Wgate|Wup (bf16)
            pl.BlockSpec((NUM_LAYERS, INTERMEDIATE, H), const3),        # Wdown (bf16)
            pl.BlockSpec((R, H), const2),                               # cos table (f32)
            pl.BlockSpec((R, H), const2),                               # sin table (f32)
            pl.BlockSpec((R, R), const2),                               # additive mask (f32)
            pl.BlockSpec((1, H), const2),                               # final norm weight
            pl.BlockSpec((D_FF, d), const2),                            # out_layer weight (bf16)
            pl.BlockSpec((1, d), const2),                               # out_layer bias (f32)
            pl.BlockSpec((R, d), const2),                               # normalized input
            pl.BlockSpec((R, d), const2),                               # per-row stdev
            pl.BlockSpec((R, d), const2),                               # per-row means
        ],
        out_specs=pl.BlockSpec((R, PACK), const2),                      # packed dec|alpha|score
        compiler_params=pltpu.CompilerParams(
            dimension_semantics=("arbitrary",),
            vmem_limit_bytes=VMEM_LIMIT_BYTES),
    )(enc, params["ln1"], params["wqkv"], params["wo"], params["ln2"],
      params["wgu"], params["wdown"], cos_f, sin_f, mask,
      params["final_norm"], params["out_w"], params["out_b"],
      xn_flat, std_flat, mean_flat)


# ------------------------------ trace-time constants ------------------------------
def _rope_tables(L, head_dim, num_heads, batch, theta=ROPE_THETA):
    inv_freq = 1.0 / (theta ** (np.arange(0, head_dim, 2, dtype=np.float32) / head_dim))
    t = np.arange(L, dtype=np.float32)
    freqs = np.outer(t, inv_freq)
    emb = np.concatenate([freqs, freqs], axis=-1)                      # (L, head_dim)
    cos = np.tile(np.cos(emb), (batch, num_heads)).astype(np.float32)  # (B*L, H)
    sin = np.tile(np.sin(emb), (batch, num_heads)).astype(np.float32)
    return jnp.asarray(cos), jnp.asarray(sin)


def _rotate_half_matrix(num_heads, head_dim):
    # x @ R == rotate_half(x) per head (block-diagonal permutation with sign).
    half = head_dim // 2
    r = np.zeros((head_dim, head_dim), dtype=np.float32)
    r[half:, :half] = -np.eye(half, dtype=np.float32)   # result[:half] = -x[half:]
    r[:half, half:] = np.eye(half, dtype=np.float32)    # result[half:] =  x[:half]
    return np.kron(np.eye(num_heads, dtype=np.float32), r)             # (H, H) f32


def _combined_mask(batch, L):
    # Block-diagonal causal additive mask over the batch-folded (B*L) rows: rows only
    # attend to earlier positions of their own batch.
    causal = np.where(np.tril(np.ones((L, L), dtype=bool)), 0.0, NEG_INF).astype(np.float32)
    full = np.full((batch * L, batch * L), NEG_INF, dtype=np.float32)
    for b in range(batch):
        full[b * L:(b + 1) * L, b * L:(b + 1) * L] = causal
    return jnp.asarray(full)


# ------------------------------------ forward ------------------------------------
def llama2_ad_forward(params, x_enc):
    B, L, d = x_enc.shape
    assert L % 4 == 0
    assert 2 * d + 1 <= PACK
    seg = L // 4
    R = B * L

    # per-segment instance normalization: 'b (n s) m -> b n s m', stats over s
    # (tiny prologue, kept in plain JAX — one small XLA fusion). unbiased=False as in
    # the PyTorch source.
    x4 = x_enc.reshape(B, 4, seg, d)
    means = jnp.mean(x4, axis=2, keepdims=True)
    xc = x4 - means
    stdev = jnp.sqrt(jnp.mean(xc * xc, axis=2, keepdims=True) + 1e-5)
    x_norm = xc / stdev
    xn_flat = x_norm.reshape(R, d)
    std_flat = jnp.broadcast_to(stdev, (B, 4, seg, d)).reshape(R, d)
    mean_flat = jnp.broadcast_to(means, (B, 4, seg, d)).reshape(R, d)

    # TODO(synk): the PyTorch source pads features to 4096 (LlamaConfig default) despite
    # constructing hidden_size=1024; here we pad to the model hidden size (self-consistent).
    enc = jnp.pad(xn_flat, ((0, 0), (0, HIDDEN - d)))

    cos_f, sin_f = _rope_tables(L, HEAD_DIM, NUM_HEADS, B)
    mask = _combined_mask(B, L)

    slab = run_fused_model(enc, params, cos_f, sin_f, mask, xn_flat, std_flat, mean_flat, d)
    slab = slab.reshape(B, L, PACK)
    dec_out = slab[..., :d]
    alpha = slab[..., d:2 * d]
    score = slab[..., 2 * d]
    return {"score": score, "alpha": alpha, "others": {"x_recon": dec_out}}


# ------------------------------ parameter init ------------------------------
def init_params(key):
    H, I = HIDDEN, INTERMEDIATE
    rot = _rotate_half_matrix(NUM_HEADS, HEAD_DIM)     # (H, H) f32, +-1/0 exact

    def rnd(k, shape, scale=0.02):
        return scale * jax.random.normal(k, shape, dtype=jnp.float32)

    keys = jax.random.split(key, NUM_LAYERS * 7 + 2)
    wqkv, wo, wgu, wdown = [], [], [], []
    for i in range(NUM_LAYERS):
        ks = keys[i * 7:(i + 1) * 7]
        q = rnd(ks[0], (H, H))
        k_ = rnd(ks[1], (H, H))
        v = rnd(ks[2], (H, H))
        q_rot = q @ rot                                # fold rotate_half into the weight
        k_rot = k_ @ rot
        wqkv.append(jnp.concatenate([q, k_, v, q_rot, k_rot], axis=1).astype(jnp.bfloat16))
        wo.append(rnd(ks[3], (H, H)).astype(jnp.bfloat16))
        g = rnd(ks[4], (H, I))
        u = rnd(ks[5], (H, I))
        wgu.append(jnp.concatenate([g, u], axis=1).astype(jnp.bfloat16))
        wdown.append(rnd(ks[6], (I, H)).astype(jnp.bfloat16))
    k_ow, k_ob = keys[-2], keys[-1]
    return dict(
        ln1=jnp.ones((NUM_LAYERS, 1, H), jnp.float32),
        ln2=jnp.ones((NUM_LAYERS, 1, H), jnp.float32),
        wqkv=jnp.stack(wqkv),                          # (NL, H, 5H) bf16
        wo=jnp.stack(wo),                              # (NL, H, H)  bf16
        wgu=jnp.stack(wgu),                            # (NL, H, 2I) bf16
        wdown=jnp.stack(wdown),                        # (NL, I, H)  bf16
        final_norm=jnp.ones((1, H), jnp.float32),
        out_w=(0.02 * jax.random.normal(k_ow, (D_FF, NUM_FEATURES))).astype(jnp.bfloat16),
        out_b=(0.02 * jax.random.normal(k_ob, (1, NUM_FEATURES))).astype(jnp.float32),
    )


# ------------------------------------ main ------------------------------------
if __name__ == "__main__":
    root = jax.random.PRNGKey(0)
    pkey, xkey = jax.random.split(root)
    params = init_params(pkey)
    x_enc = jax.random.normal(xkey, (BATCH, SEQ, NUM_FEATURES), dtype=jnp.float32)

    out = jax.jit(llama2_ad_forward)(params, x_enc)
    out = jax.block_until_ready(out)

    assert out["score"].shape == (BATCH, SEQ)
    assert out["alpha"].shape == (BATCH, SEQ, NUM_FEATURES)
    assert out["others"]["x_recon"].shape == (BATCH, SEQ, NUM_FEATURES)
    assert bool(jnp.all(jnp.isfinite(out["score"])))
    assert bool(jnp.all(jnp.isfinite(out["alpha"])))
    assert bool(jnp.all(jnp.isfinite(out["others"]["x_recon"])))
    print("KERNEL_OK")
</pallas_src>

<mosaic_0001>
module attributes {stable_mosaic.version = 11 : i64} {
  func.func @_fused_kernel(%arg0: i32, %arg1: memref<16x128xf32, #tpu.memory_space<vmem>>, %arg2: memref<4x1x128xf32, #tpu.memory_space<vmem>>, %arg3: memref<4x128x640xbf16, #tpu.memory_space<vmem>>, %arg4: memref<4x128x128xbf16, #tpu.memory_space<vmem>>, %arg5: memref<4x1x128xf32, #tpu.memory_space<vmem>>, %arg6: memref<4x128x512xbf16, #tpu.memory_space<vmem>>, %arg7: memref<4x256x128xbf16, #tpu.memory_space<vmem>>, %arg8: memref<16x128xf32, #tpu.memory_space<vmem>>, %arg9: memref<16x128xf32, #tpu.memory_space<vmem>>, %arg10: memref<16x16xf32, #tpu.memory_space<vmem>>, %arg11: memref<1x128xf32, #tpu.memory_space<vmem>>, %arg12: memref<32x8xbf16, #tpu.memory_space<vmem>>, %arg13: memref<1x8xf32, #tpu.memory_space<vmem>>, %arg14: memref<16x8xf32, #tpu.memory_space<vmem>>, %arg15: memref<16x8xf32, #tpu.memory_space<vmem>>, %arg16: memref<16x8xf32, #tpu.memory_space<vmem>>, %arg17: memref<16x128xf32, #tpu.memory_space<vmem>>) attributes {dimension_semantics = [#tpu.dimension_semantics<arbitrary>], iteration_bounds = array<i64: 4>, scalar_prefetch = 0 : i64, scratch_operands = 0 : i64, tpu.core_type = #tpu.core_type<tc>, window_params = [{pipeline_mode = #tpu.pipeline_mode<synchronous>, transform_indices = @transform_0, window_bounds = array<i64: 16, 128>}, {pipeline_mode = #tpu.pipeline_mode<synchronous>, transform_indices = @transform_1, window_bounds = array<i64: 4, 1, 128>}, {pipeline_mode = #tpu.pipeline_mode<synchronous>, transform_indices = @transform_2, window_bounds = array<i64: 4, 128, 640>}, {pipeline_mode = #tpu.pipeline_mode<synchronous>, transform_indices = @transform_3, window_bounds = array<i64: 4, 128, 128>}, {pipeline_mode = #tpu.pipeline_mode<synchronous>, transform_indices = @transform_4, window_bounds = array<i64: 4, 1, 128>}, {pipeline_mode = #tpu.pipeline_mode<synchronous>, transform_indices = @transform_5, window_bounds = array<i64: 4, 128, 512>}, {pipeline_mode = #tpu.pipeline_mode<synchronous>, transform_indices = @transform_6, window_bounds = array<i64: 4, 256, 128>}, {pipeline_mode = #tpu.pipeline_mode<synchronous>, transform_indices = @transform_7, window_bounds = array<i64: 16, 128>}, {pipeline_mode = #tpu.pipeline_mode<synchronous>, transform_indices = @transform_8, window_bounds = array<i64: 16, 128>}, {pipeline_mode = #tpu.pipeline_mode<synchronous>, transform_indices = @transform_9, window_bounds = array<i64: 16, 16>}, {pipeline_mode = #tpu.pipeline_mode<synchronous>, transform_indices = @transform_10, window_bounds = array<i64: 1, 128>}, {pipeline_mode = #tpu.pipeline_mode<synchronous>, transform_indices = @transform_11, window_bounds = array<i64: 32, 8>}, {pipeline_mode = #tpu.pipeline_mode<synchronous>, transform_indices = @transform_12, window_bounds = array<i64: 1, 8>}, {pipeline_mode = #tpu.pipeline_mode<synchronous>, transform_indices = @transform_13, window_bounds = array<i64: 16, 8>}, {pipeline_mode = #tpu.pipeline_mode<synchronous>, transform_indices = @transform_14, window_bounds = array<i64: 16, 8>}, {pipeline_mode = #tpu.pipeline_mode<synchronous>, transform_indices = @transform_15, window_bounds = array<i64: 16, 8>}, {pipeline_mode = #tpu.pipeline_mode<synchronous>, transform_indices = @transform_16, window_bounds = array<i64: 16, 128>}]} {
    %c0_i32 = arith.constant 0 : i32
    %0 = arith.cmpi eq, %arg0, %c0_i32 : i32
    %1 = arith.extui %0 : i1 to i32
    %c0_i32_0 = arith.constant 0 : i32
    %2 = arith.cmpi ne, %1, %c0_i32_0 : i32
    scf.if %2 {
      %c0_54 = arith.constant 0 : index
      %c0_55 = arith.constant 0 : index
      %182 = vector.load %arg1[%c0_54, %c0_55] : memref<16x128xf32, #tpu.memory_space<vmem>>, vector<16x128xf32>
      %c0_56 = arith.constant 0 : index
      %c0_57 = arith.constant 0 : index
      %183 = vector.load %arg17[%c0_56, %c0_57] : memref<16x128xf32, #tpu.memory_space<vmem>>, vector<16x128xf32>
      tpu.vector_store %arg17[%c0_56, %c0_57], %182 {strides = array<i32>} : memref<16x128xf32, #tpu.memory_space<vmem>>, vector<16x128xf32>,
    } else {
    }
    %c0 = arith.constant 0 : index
    %c0_1 = arith.constant 0 : index
    %3 = vector.load %arg17[%c0, %c0_1] : memref<16x128xf32, #tpu.memory_space<vmem>>, vector<16x128xf32>
    %4 = arith.index_cast %arg0 : i32 to index
    %c0_2 = arith.constant 0 : index
    %c0_3 = arith.constant 0 : index
    %5 = vector.load %arg2[%4, %c0_2, %c0_3] : memref<4x1x128xf32, #tpu.memory_space<vmem>>, vector<1x1x128xf32>
    %6 = vector.shape_cast %5 : vector<1x1x128xf32> to vector<1x128xf32>
    %7 = arith.mulf %3, %3 : vector<16x128xf32>
    %cst = arith.constant dense<0.000000e+00> : vector<16xf32>
    %8 = vector.multi_reduction <add>, %7, %cst [1] : vector<16x128xf32> to vector<16xf32>
    %9 = vector.shape_cast %8 : vector<16xf32> to vector<16x1xf32>
    %cst_4 = arith.constant 1.280000e+02 : f32
    %10 = vector.broadcast %cst_4 : f32 to vector<16x1xf32>
    %11 = arith.divf %9, %10 : vector<16x1xf32>
    %cst_5 = arith.constant 9.99999997E-7 : f32
    %12 = vector.broadcast %cst_5 : f32 to vector<16x1xf32>
    %13 = arith.addf %11, %12 : vector<16x1xf32>
    %14 = math.rsqrt %13 : vector<16x1xf32>
    %15 = vector.broadcast %14 : vector<16x1xf32> to vector<16x128xf32>
    %16 = arith.mulf %3, %15 : vector<16x128xf32>
    %17 = vector.broadcast %6 : vector<1x128xf32> to vector<16x128xf32>
    %18 = arith.mulf %16, %17 : vector<16x128xf32>
    %19 = arith.truncf %18 : vector<16x128xf32> to vector<16x128xbf16>
    %20 = arith.index_cast %arg0 : i32 to index
    %c0_6 = arith.constant 0 : index
    %c0_7 = arith.constant 0 : index
    %21 = vector.load %arg3[%20, %c0_6, %c0_7] : memref<4x128x640xbf16, #tpu.memory_space<vmem>>, vector<1x128x640xbf16>
    %22 = vector.shape_cast %21 : vector<1x128x640xbf16> to vector<128x640xbf16>
    %cst_8 = arith.constant dense<0.000000e+00> : vector<16x640xf32>
    %23 = tpu.matmul %19, %22, %cst_8 {dimension_numbers = #tpu.dot_dimension_numbers<[1], [0], [0], [1], [0, 0, 1, 1], [], []>} : vector<16x128xbf16>, vector<128x640xbf16>, vector<16x640xf32> -> vector<16x640xf32>
    %24 = vector.extract_strided_slice %23 {offsets = [0, 0], sizes = [16, 128], strides = [1, 1]} : vector<16x640xf32> to vector<16x128xf32>
    %25 = vector.extract_strided_slice %23 {offsets = [0, 128], sizes = [16, 128], strides = [1, 1]} : vector<16x640xf32> to vector<16x128xf32>
    %26 = vector.extract_strided_slice %23 {offsets = [0, 256], sizes = [16, 128], strides = [1, 1]} : vector<16x640xf32> to vector<16x128xf32>
    %27 = vector.extract_strided_slice %23 {offsets = [0, 384], sizes = [16, 128], strides = [1, 1]} : vector<16x640xf32> to vector<16x128xf32>
    %28 = vector.extract_strided_slice %23 {offsets = [0, 512], sizes = [16, 128], strides = [1, 1]} : vector<16x640xf32> to vector<16x128xf32>
    %c0_9 = arith.constant 0 : index
    %c0_10 = arith.constant 0 : index
    %29 = vector.load %arg8[%c0_9, %c0_10] : memref<16x128xf32, #tpu.memory_space<vmem>>, vector<16x128xf32>
    %c0_11 = arith.constant 0 : index
    %c0_12 = arith.constant 0 : index
    %30 = vector.load %arg9[%c0_11, %c0_12] : memref<16x128xf32, #tpu.memory_space<vmem>>, vector<16x128xf32>
    %31 = arith.mulf %24, %29 : vector<16x128xf32>
    %32 = arith.mulf %27, %30 : vector<16x128xf32>
    %33 = arith.addf %31, %32 : vector<16x128xf32>
    %cst_13 = arith.constant 0.176776692 : f32
    %34 = vector.broadcast %cst_13 : f32 to vector<16x128xf32>
    %35 = arith.mulf %33, %34 : vector<16x128xf32>
    %36 = arith.mulf %25, %29 : vector<16x128xf32>
    %37 = arith.mulf %28, %30 : vector<16x128xf32>
    %38 = arith.addf %36, %37 : vector<16x128xf32>
    %c0_14 = arith.constant 0 : index
    %c0_15 = arith.constant 0 : index
    %39 = vector.load %arg10[%c0_14, %c0_15] : memref<16x16xf32, #tpu.memory_space<vmem>>, vector<16x16xf32>
    %40 = arith.index_cast %arg0 : i32 to index
    %c0_16 = arith.constant 0 : index
    %c0_17 = arith.constant 0 : index
    %41 = vector.load %arg4[%40, %c0_16, %c0_17] : memref<4x128x128xbf16, #tpu.memory_space<vmem>>, vector<1x128x128xbf16>
    %42 = vector.shape_cast %41 : vector<1x128x128xbf16> to vector<128x128xbf16>
    %cst_18 = arith.constant 0.000000e+00 : f32
    %43 = vector.broadcast %cst_18 : f32 to vector<16x128xf32>
    %44 = vector.extract_strided_slice %35 {offsets = [0, 0], sizes = [16, 32], strides = [1, 1]} : vector<16x128xf32> to vector<16x32xf32>
    %45 = arith.truncf %44 : vector<16x32xf32> to vector<16x32xbf16>
    %46 = vector.extract_strided_slice %38 {offsets = [0, 0], sizes = [16, 32], strides = [1, 1]} : vector<16x128xf32> to vector<16x32xf32>
    %47 = arith.truncf %46 : vector<16x32xf32> to vector<16x32xbf16>
    %48 = vector.extract_strided_slice %26 {offsets = [0, 0], sizes = [16, 32], strides = [1, 1]} : vector<16x128xf32> to vector<16x32xf32>
    %49 = arith.truncf %48 : vector<16x32xf32> to vector<16x32xbf16>
    %cst_19 = arith.constant dense<0.000000e+00> : vector<16x16xf32>
    %50 = tpu.matmul %45, %47, %cst_19 {dimension_numbers = #tpu.dot_dimension_numbers<[1], [1], [0], [0], [0, 0, 1, 0], [], []>} : vector<16x32xbf16>, vector<16x32xbf16>, vector<16x16xf32> -> vector<16x16xf32>
    %51 = arith.addf %50, %39 : vector<16x16xf32>
    %cst_20 = arith.constant dense<0xFF800000> : vector<16xf32>
    %52 = vector.multi_reduction <maximumf>, %51, %cst_20 [1] : vector<16x16xf32> to vector<16xf32>
    %53 = vector.shape_cast %52 : vector<16xf32> to vector<16x1xf32>
    %54 = vector.broadcast %53 : vector<16x1xf32> to vector<16x16xf32>
    %55 = arith.subf %51, %54 : vector<16x16xf32>
    %56 = math.exp %55 : vector<16x16xf32>
    %cst_21 = arith.constant dense<0.000000e+00> : vector<16xf32>
    %57 = vector.multi_reduction <add>, %56, %cst_21 [1] : vector<16x16xf32> to vector<16xf32>
    %58 = vector.shape_cast %57 : vector<16xf32> to vector<16x1xf32>
    %59 = tpu.reciprocal %58 {approx = true} : vector<16x1xf32> -> vector<16x1xf32>
    %60 = vector.broadcast %59 : vector<16x1xf32> to vector<16x16xf32>
    %61 = arith.mulf %56, %60 : vector<16x16xf32>
    %62 = arith.truncf %61 : vector<16x16xf32> to vector<16x16xbf16>
    %cst_22 = arith.constant dense<0.000000e+00> : vector<16x32xf32>
    %63 = tpu.matmul %62, %49, %cst_22 {dimension_numbers = #tpu.dot_dimension_numbers<[1], [0], [0], [1], [0, 0, 1, 1], [], []>} : vector<16x16xbf16>, vector<16x32xbf16>, vector<16x32xf32> -> vector<16x32xf32>
    %64 = arith.truncf %63 : vector<16x32xf32> to vector<16x32xbf16>
    %65 = vector.extract_strided_slice %42 {offsets = [0, 0], sizes = [32, 128], strides = [1, 1]} : vector<128x128xbf16> to vector<32x128xbf16>
    %cst_23 = arith.constant dense<0.000000e+00> : vector<16x128xf32>
    %66 = tpu.matmul %64, %65, %cst_23 {dimension_numbers = #tpu.dot_dimension_numbers<[1], [0], [0], [1], [0, 0, 1, 1], [], []>} : vector<16x32xbf16>, vector<32x128xbf16>, vector<16x128xf32> -> vector<16x128xf32>
    %67 = arith.addf %43, %66 : vector<16x128xf32>
    %68 = vector.extract_strided_slice %35 {offsets = [0, 32], sizes = [16, 32], strides = [1, 1]} : vector<16x128xf32> to vector<16x32xf32>
    %69 = arith.truncf %68 : vector<16x32xf32> to vector<16x32xbf16>
    %70 = vector.extract_strided_slice %38 {offsets = [0, 32], sizes = [16, 32], strides = [1, 1]} : vector<16x128xf32> to vector<16x32xf32>
    %71 = arith.truncf %70 : vector<16x32xf32> to vector<16x32xbf16>
    %72 = vector.extract_strided_slice %26 {offsets = [0, 32], sizes = [16, 32], strides = [1, 1]} : vector<16x128xf32> to vector<16x32xf32>
    %73 = arith.truncf %72 : vector<16x32xf32> to vector<16x32xbf16>
    %cst_24 = arith.constant dense<0.000000e+00> : vector<16x16xf32>
    %74 = tpu.matmul %69, %71, %cst_24 {dimension_numbers = #tpu.dot_dimension_numbers<[1], [1], [0], [0], [0, 0, 1, 0], [], []>} : vector<16x32xbf16>, vector<16x32xbf16>, vector<16x16xf32> -> vector<16x16xf32>
    %75 = arith.addf %74, %39 : vector<16x16xf32>
    %cst_25 = arith.constant dense<0xFF800000> : vector<16xf32>
    %76 = vector.multi_reduction <maximumf>, %75, %cst_25 [1] : vector<16x16xf32> to vector<16xf32>
    %77 = vector.shape_cast %76 : vector<16xf32> to vector<16x1xf32>
    %78 = vector.broadcast %77 : vector<16x1xf32> to vector<16x16xf32>
    %79 = arith.subf %75, %78 : vector<16x16xf32>
    %80 = math.exp %79 : vector<16x16xf32>
    %cst_26 = arith.constant dense<0.000000e+00> : vector<16xf32>
    %81 = vector.multi_reduction <add>, %80, %cst_26 [1] : vector<16x16xf32> to vector<16xf32>
    %82 = vector.shape_cast %81 : vector<16xf32> to vector<16x1xf32>
    %83 = tpu.reciprocal %82 {approx = true} : vector<16x1xf32> -> vector<16x1xf32>
    %84 = vector.broadcast %83 : vector<16x1xf32> to vector<16x16xf32>
    %85 = arith.mulf %80, %84 : vector<16x16xf32>
    %86 = arith.truncf %85 : vector<16x16xf32> to vector<16x16xbf16>
    %cst_27 = arith.constant dense<0.000000e+00> : vector<16x32xf32>
    %87 = tpu.matmul %86, %73, %cst_27 {dimension_numbers = #tpu.dot_dimension_numbers<[1], [0], [0], [1], [0, 0, 1, 1], [], []>} : vector<16x16xbf16>, vector<16x32xbf16>, vector<16x32xf32> -> vector<16x32xf32>
    %88 = arith.truncf %87 : vector<16x32xf32> to vector<16x32xbf16>
    %89 = vector.extract_strided_slice %42 {offsets = [32, 0], sizes = [32, 128], strides = [1, 1]} : vector<128x128xbf16> to vector<32x128xbf16>
    %cst_28 = arith.constant dense<0.000000e+00> : vector<16x128xf32>
    %90 = tpu.matmul %88, %89, %cst_28 {dimension_numbers = #tpu.dot_dimension_numbers<[1], [0], [0], [1], [0, 0, 1, 1], [], []>} : vector<16x32xbf16>, vector<32x128xbf16>, vector<16x128xf32> -> vector<16x128xf32>
    %91 = arith.addf %67, %90 : vector<16x128xf32>
    %92 = vector.extract_strided_slice %35 {offsets = [0, 64], sizes = [16, 32], strides = [1, 1]} : vector<16x128xf32> to vector<16x32xf32>
    %93 = arith.truncf %92 : vector<16x32xf32> to vector<16x32xbf16>
    %94 = vector.extract_strided_slice %38 {offsets = [0, 64], sizes = [16, 32], strides = [1, 1]} : vector<16x128xf32> to vector<16x32xf32>
    %95 = arith.truncf %94 : vector<16x32xf32> to vector<16x32xbf16>
    %96 = vector.extract_strided_slice %26 {offsets = [0, 64], sizes = [16, 32], strides = [1, 1]} : vector<16x128xf32> to vector<16x32xf32>
    %97 = arith.truncf %96 : vector<16x32xf32> to vector<16x32xbf16>
    %cst_29 = arith.constant dense<0.000000e+00> : vector<16x16xf32>
    %98 = tpu.matmul %93, %95, %cst_29 {dimension_numbers = #tpu.dot_dimension_numbers<[1], [1], [0], [0], [0, 0, 1, 0], [], []>} : vector<16x32xbf16>, vector<16x32xbf16>, vector<16x16xf32> -> vector<16x16xf32>
    %99 = arith.addf %98, %39 : vector<16x16xf32>
    %cst_30 = arith.constant dense<0xFF800000> : vector<16xf32>
    %100 = vector.multi_reduction <maximumf>, %99, %cst_30 [1] : vector<16x16xf32> to vector<16xf32>
    %101 = vector.shape_cast %100 : vector<16xf32> to vector<16x1xf32>
    %102 = vector.broadcast %101 : vector<16x1xf32> to vector<16x16xf32>
    %103 = arith.subf %99, %102 : vector<16x16xf32>
    %104 = math.exp %103 : vector<16x16xf32>
    %cst_31 = arith.constant dense<0.000000e+00> : vector<16xf32>
    %105 = vector.multi_reduction <add>, %104, %cst_31 [1] : vector<16x16xf32> to vector<16xf32>
    %106 = vector.shape_cast %105 : vector<16xf32> to vector<16x1xf32>
    %107 = tpu.reciprocal %106 {approx = true} : vector<16x1xf32> -> vector<16x1xf32>
    %108 = vector.broadcast %107 : vector<16x1xf32> to vector<16x16xf32>
    %109 = arith.mulf %104, %108 : vector<16x16xf32>
    %110 = arith.truncf %109 : vector<16x16xf32> to vector<16x16xbf16>
    %cst_32 = arith.constant dense<0.000000e+00> : vector<16x32xf32>
    %111 = tpu.matmul %110, %97, %cst_32 {dimension_numbers = #tpu.dot_dimension_numbers<[1], [0], [0], [1], [0, 0, 1, 1], [], []>} : vector<16x16xbf16>, vector<16x32xbf16>, vector<16x32xf32> -> vector<16x32xf32>
    %112 = arith.truncf %111 : vector<16x32xf32> to vector<16x32xbf16>
    %113 = vector.extract_strided_slice %42 {offsets = [64, 0], sizes = [32, 128], strides = [1, 1]} : vector<128x128xbf16> to vector<32x128xbf16>
    %cst_33 = arith.constant dense<0.000000e+00> : vector<16x128xf32>
    %114 = tpu.matmul %112, %113, %cst_33 {dimension_numbers = #tpu.dot_dimension_numbers<[1], [0], [0], [1], [0, 0, 1, 1], [], []>} : vector<16x32xbf16>, vector<32x128xbf16>, vector<16x128xf32> -> vector<16x128xf32>
    %115 = arith.addf %91, %114 : vector<16x128xf32>
    %116 = vector.extract_strided_slice %35 {offsets = [0, 96], sizes = [16, 32], strides = [1, 1]} : vector<16x128xf32> to vector<16x32xf32>
    %117 = arith.truncf %116 : vector<16x32xf32> to vector<16x32xbf16>
    %118 = vector.extract_strided_slice %38 {offsets = [0, 96], sizes = [16, 32], strides = [1, 1]} : vector<16x128xf32> to vector<16x32xf32>
    %119 = arith.truncf %118 : vector<16x32xf32> to vector<16x32xbf16>
    %120 = vector.extract_strided_slice %26 {offsets = [0, 96], sizes = [16, 32], strides = [1, 1]} : vector<16x128xf32> to vector<16x32xf32>
    %121 = arith.truncf %120 : vector<16x32xf32> to vector<16x32xbf16>
    %cst_34 = arith.constant dense<0.000000e+00> : vector<16x16xf32>
    %122 = tpu.matmul %117, %119, %cst_34 {dimension_numbers = #tpu.dot_dimension_numbers<[1], [1], [0], [0], [0, 0, 1, 0], [], []>} : vector<16x32xbf16>, vector<16x32xbf16>, vector<16x16xf32> -> vector<16x16xf32>
    %123 = arith.addf %122, %39 : vector<16x16xf32>
    %cst_35 = arith.constant dense<0xFF800000> : vector<16xf32>
    %124 = vector.multi_reduction <maximumf>, %123, %cst_35 [1] : vector<16x16xf32> to vector<16xf32>
    %125 = vector.shape_cast %124 : vector<16xf32> to vector<16x1xf32>
    %126 = vector.broadcast %125 : vector<16x1xf32> to vector<16x16xf32>
    %127 = arith.subf %123, %126 : vector<16x16xf32>
    %128 = math.exp %127 : vector<16x16xf32>
    %cst_36 = arith.constant dense<0.000000e+00> : vector<16xf32>
    %129 = vector.multi_reduction <add>, %128, %cst_36 [1] : vector<16x16xf32> to vector<16xf32>
    %130 = vector.shape_cast %129 : vector<16xf32> to vector<16x1xf32>
    %131 = tpu.reciprocal %130 {approx = true} : vector<16x1xf32> -> vector<16x1xf32>
    %132 = vector.broadcast %131 : vector<16x1xf32> to vector<16x16xf32>
    %133 = arith.mulf %128, %132 : vector<16x16xf32>
    %134 = arith.truncf %133 : vector<16x16xf32> to vector<16x16xbf16>
    %cst_37 = arith.constant dense<0.000000e+00> : vector<16x32xf32>
    %135 = tpu.matmul %134, %121, %cst_37 {dimension_numbers = #tpu.dot_dimension_numbers<[1], [0], [0], [1], [0, 0, 1, 1], [], []>} : vector<16x16xbf16>, vector<16x32xbf16>, vector<16x32xf32> -> vector<16x32xf32>
    %136 = arith.truncf %135 : vector<16x32xf32> to vector<16x32xbf16>
    %137 = vector.extract_strided_slice %42 {offsets = [96, 0], sizes = [32, 128], strides = [1, 1]} : vector<128x128xbf16> to vector<32x128xbf16>
    %cst_38 = arith.constant dense<0.000000e+00> : vector<16x128xf32>
    %138 = tpu.matmul %136, %137, %cst_38 {dimension_numbers = #tpu.dot_dimension_numbers<[1], [0], [0], [1], [0, 0, 1, 1], [], []>} : vector<16x32xbf16>, vector<32x128xbf16>, vector<16x128xf32> -> vector<16x128xf32>
    %139 = arith.addf %115, %138 : vector<16x128xf32>
    %140 = arith.addf %3, %139 : vector<16x128xf32>
    %141 = arith.index_cast %arg0 : i32 to index
    %c0_39 = arith.constant 0 : index
    %c0_40 = arith.constant 0 : index
    %142 = vector.load %arg5[%141, %c0_39, %c0_40] : memref<4x1x128xf32, #tpu.memory_space<vmem>>, vector<1x1x128xf32>
    %143 = vector.shape_cast %142 : vector<1x1x128xf32> to vector<1x128xf32>
    %144 = arith.mulf %140, %140 : vector<16x128xf32>
    %cst_41 = arith.constant dense<0.000000e+00> : vector<16xf32>
    %145 = vector.multi_reduction <add>, %144, %cst_41 [1] : vector<16x128xf32> to vector<16xf32>
    %146 = vector.shape_cast %145 : vector<16xf32> to vector<16x1xf32>
    %cst_42 = arith.constant 1.280000e+02 : f32
    %147 = vector.broadcast %cst_42 : f32 to vector<16x1xf32>
    %148 = arith.divf %146, %147 : vector<16x1xf32>
    %cst_43 = arith.constant 9.99999997E-7 : f32
    %149 = vector.broadcast %cst_43 : f32 to vector<16x1xf32>
    %150 = arith.addf %148, %149 : vector<16x1xf32>
    %151 = math.rsqrt %150 : vector<16x1xf32>
    %152 = vector.broadcast %151 : vector<16x1xf32> to vector<16x128xf32>
    %153 = arith.mulf %140, %152 : vector<16x128xf32>
    %154 = vector.broadcast %143 : vector<1x128xf32> to vector<16x128xf32>
    %155 = arith.mulf %153, %154 : vector<16x128xf32>
    %156 = arith.truncf %155 : vector<16x128xf32> to vector<16x128xbf16>
    %157 = arith.index_cast %arg0 : i32 to index
    %c0_44 = arith.constant 0 : index
    %c0_45 = arith.constant 0 : index
    %158 = vector.load %arg6[%157, %c0_44, %c0_45] : memref<4x128x512xbf16, #tpu.memory_space<vmem>>, vector<1x128x512xbf16>
    %159 = vector.shape_cast %158 : vector<1x128x512xbf16> to vector<128x512xbf16>
    %cst_46 = arith.constant dense<0.000000e+00> : vector<16x512xf32>
    %160 = tpu.matmul %156, %159, %cst_46 {dimension_numbers = #tpu.dot_dimension_numbers<[1], [0], [0], [1], [0, 0, 1, 1], [], []>} : vector<16x128xbf16>, vector<128x512xbf16>, vector<16x512xf32> -> vector<16x512xf32>
    %161 = vector.extract_strided_slice %160 {offsets = [0, 0], sizes = [16, 256], strides = [1, 1]} : vector<16x512xf32> to vector<16x256xf32>
    %162 = vector.extract_strided_slice %160 {offsets = [0, 256], sizes = [16, 256], strides = [1, 1]} : vector<16x512xf32> to vector<16x256xf32>
    %163 = arith.negf %161 : vector<16x256xf32>
    %164 = math.exp %163 : vector<16x256xf32>
    %cst_47 = arith.constant 1.000000e+00 : f32
    %165 = vector.broadcast %cst_47 : f32 to vector<16x256xf32>
    %166 = arith.addf %165, %164 : vector<16x256xf32>
    %167 = arith.divf %165, %166 : vector<16x256xf32>
    %168 = arith.mulf %161, %167 : vector<16x256xf32>
    %169 = arith.mulf %168, %162 : vector<16x256xf32>
    %170 = arith.truncf %169 : vector<16x256xf32> to vector<16x256xbf16>
    %171 = arith.index_cast %arg0 : i32 to index
    %c0_48 = arith.constant 0 : index
    %c0_49 = arith.constant 0 : index
    %172 = vector.load %arg7[%171, %c0_48, %c0_49] : memref<4x256x128xbf16, #tpu.memory_space<vmem>>, vector<1x256x128xbf16>
    %173 = vector.shape_cast %172 : vector<1x256x128xbf16> to vector<256x128xbf16>
    %cst_50 = arith.constant dense<0.000000e+00> : vector<16x128xf32>
    %174 = tpu.matmul %170, %173, %cst_50 {dimension_numbers = #tpu.dot_dimension_numbers<[1], [0], [0], [1], [0, 0, 1, 1], [], []>} : vector<16x256xbf16>, vector<256x128xbf16>, vector<16x128xf32> -> vector<16x128xf32>
    %175 = arith.addf %140, %174 : vector<16x128xf32>
    %c3_i32 = arith.constant 3 : i32
    %176 = arith.cmpi slt, %arg0, %c3_i32 : i32
    %177 = arith.extui %176 : i1 to i32
    %c0_i32_51 = arith.constant 0 : i32
    %178 = arith.cmpi ne, %177, %c0_i32_51 : i32
    scf.if %178 {
      %c0_54 = arith.constant 0 : index
      %c0_55 = arith.constant 0 : index
      %182 = vector.load %arg17[%c0_54, %c0_55] : memref<16x128xf32, #tpu.memory_space<vmem>>, vector<16x128xf32>
      tpu.vector_store %arg17[%c0_54, %c0_55], %175 {strides = array<i32>} : memref<16x128xf32, #tpu.memory_space<vmem>>, vector<16x128xf32>,
    } else {
    }
    %c3_i32_52 = arith.constant 3 : i32
    %179 = arith.cmpi eq, %arg0, %c3_i32_52 : i32
    %180 = arith.extui %179 : i1 to i32
    %c0_i32_53 = arith.constant 0 : i32
    %181 = arith.cmpi ne, %180, %c0_i32_53 : i32
    scf.if %181 {
      %c0_54 = arith.constant 0 : index
      %c0_55 = arith.constant 0 : index
      %182 = vector.load %arg11[%c0_54, %c0_55] : memref<1x128xf32, #tpu.memory_space<vmem>>, vector<1x128xf32>
      %183 = arith.mulf %175, %175 : vector<16x128xf32>
      %cst_56 = arith.constant dense<0.000000e+00> : vector<16xf32>
      %184 = vector.multi_reduction <add>, %183, %cst_56 [1] : vector<16x128xf32> to vector<16xf32>
      %185 = vector.shape_cast %184 : vector<16xf32> to vector<16x1xf32>
      %cst_57 = arith.constant 1.280000e+02 : f32
      %186 = vector.broadcast %cst_57 : f32 to vector<16x1xf32>
      %187 = arith.divf %185, %186 : vector<16x1xf32>
      %cst_58 = arith.constant 9.99999997E-7 : f32
      %188 = vector.broadcast %cst_58 : f32 to vector<16x1xf32>
      %189 = arith.addf %187, %188 : vector<16x1xf32>
      %190 = math.rsqrt %189 : vector<16x1xf32>
      %191 = vector.broadcast %190 : vector<16x1xf32> to vector<16x128xf32>
      %192 = arith.mulf %175, %191 : vector<16x128xf32>
      %193 = vector.broadcast %182 : vector<1x128xf32> to vector<16x128xf32>
      %194 = arith.mulf %192, %193 : vector<16x128xf32>
      %195 = vector.extract_strided_slice %194 {offsets = [0, 0], sizes = [16, 32], strides = [1, 1]} : vector<16x128xf32> to vector<16x32xf32>
      %196 = arith.truncf %195 : vector<16x32xf32> to vector<16x32xbf16>
      %c0_59 = arith.constant 0 : index
      %c0_60 = arith.constant 0 : index
      %197 = vector.load %arg12[%c0_59, %c0_60] : memref<32x8xbf16, #tpu.memory_space<vmem>>, vector<32x8xbf16>
      %cst_61 = arith.constant dense<0.000000e+00> : vector<16x8xf32>
      %198 = tpu.matmul %196, %197, %cst_61 {dimension_numbers = #tpu.dot_dimension_numbers<[1], [0], [0], [1], [0, 0, 1, 1], [], []>} : vector<16x32xbf16>, vector<32x8xbf16>, vector<16x8xf32> -> vector<16x8xf32>
      %c0_62 = arith.constant 0 : index
      %c0_63 = arith.constant 0 : index
      %199 = vector.load %arg13[%c0_62, %c0_63] : memref<1x8xf32, #tpu.memory_space<vmem>>, vector<1x8xf32>
      %200 = vector.broadcast %199 : vector<1x8xf32> to vector<16x8xf32>
      %201 = arith.addf %198, %200 : vector<16x8xf32>
      %c0_64 = arith.constant 0 : index
      %c0_65 = arith.constant 0 : index
      %202 = vector.load %arg15[%c0_64, %c0_65] : memref<16x8xf32, #tpu.memory_space<vmem>>, vector<16x8xf32>
      %203 = arith.mulf %201, %202 : vector<16x8xf32>
      %c0_66 = arith.constant 0 : index
      %c0_67 = arith.constant 0 : index
      %204 = vector.load %arg16[%c0_66, %c0_67] : memref<16x8xf32, #tpu.memory_space<vmem>>, vector<16x8xf32>
      %205 = arith.addf %203, %204 : vector<16x8xf32>
      %c0_68 = arith.constant 0 : index
      %c0_69 = arith.constant 0 : index
      %206 = vector.load %arg14[%c0_68, %c0_69] : memref<16x8xf32, #tpu.memory_space<vmem>>, vector<16x8xf32>
      %207 = arith.subf %206, %205 : vector<16x8xf32>
      %208 = arith.mulf %207, %207 : vector<16x8xf32>
      %cst_70 = arith.constant dense<0.000000e+00> : vector<16xf32>
      %209 = vector.multi_reduction <add>, %208, %cst_70 [1] : vector<16x8xf32> to vector<16xf32>
      %210 = vector.shape_cast %209 : vector<16xf32> to vector<16x1xf32>
      %cst_71 = arith.constant 8.000000e+00 : f32
      %211 = vector.broadcast %cst_71 : f32 to vector<16x1xf32>
      %212 = arith.divf %210, %211 : vector<16x1xf32>
      %cst_72 = arith.constant 0.000000e+00 : f32
      %213 = vector.broadcast %cst_72 : f32 to vector<16x111xf32>
      %214 = tpu.concatenate %205, %208, %212, %213 in 1 : vector<16x8xf32>, vector<16x8xf32>, vector<16x1xf32>, vector<16x111xf32> -> vector<16x128xf32>
      %c0_73 = arith.constant 0 : index
      %c0_74 = arith.constant 0 : index
      %215 = vector.load %arg17[%c0_73, %c0_74] : memref<16x128xf32, #tpu.memory_space<vmem>>, vector<16x128xf32>
      tpu.vector_store %arg17[%c0_73, %c0_74], %214 {strides = array<i32>} : memref<16x128xf32, #tpu.memory_space<vmem>>, vector<16x128xf32>,
    } else {
    }
    return
  }
  func.func @transform_0(%arg0: i32) -> (i32, i32) {
    %c0_i32 = arith.constant 0 : i32
    %c0_i32_0 = arith.constant 0 : i32
    %c0_i32_1 = arith.constant 0 : i32
    return %c0_i32, %c0_i32_0 : i32, i32
  }
  func.func @transform_1(%arg0: i32) -> (i32, i32, i32) {
    %c0_i32 = arith.constant 0 : i32
    %c0_i32_0 = arith.constant 0 : i32
    %c0_i32_1 = arith.constant 0 : i32
    %c0_i32_2 = arith.constant 0 : i32
    return %c0_i32, %c0_i32_0, %c0_i32_1 : i32, i32, i32
  }
  func.func @transform_2(%arg0: i32) -> (i32, i32, i32) {
    %c0_i32 = arith.constant 0 : i32
    %c0_i32_0 = arith.constant 0 : i32
    %c0_i32_1 = arith.constant 0 : i32
    %c0_i32_2 = arith.constant 0 : i32
    return %c0_i32, %c0_i32_0, %c0_i32_1 : i32, i32, i32
  }
  func.func @transform_3(%arg0: i32) -> (i32, i32, i32) {
    %c0_i32 = arith.constant 0 : i32
    %c0_i32_0 = arith.constant 0 : i32
    %c0_i32_1 = arith.constant 0 : i32
    %c0_i32_2 = arith.constant 0 : i32
    return %c0_i32, %c0_i32_0, %c0_i32_1 : i32, i32, i32
  }
  func.func @transform_4(%arg0: i32) -> (i32, i32, i32) {
    %c0_i32 = arith.constant 0 : i32
    %c0_i32_0 = arith.constant 0 : i32
    %c0_i32_1 = arith.constant 0 : i32
    %c0_i32_2 = arith.constant 0 : i32
    return %c0_i32, %c0_i32_0, %c0_i32_1 : i32, i32, i32
  }
  func.func @transform_5(%arg0: i32) -> (i32, i32, i32) {
    %c0_i32 = arith.constant 0 : i32
    %c0_i32_0 = arith.constant 0 : i32
    %c0_i32_1 = arith.constant 0 : i32
    %c0_i32_2 = arith.constant 0 : i32
    return %c0_i32, %c0_i32_0, %c0_i32_1 : i32, i32, i32
  }
  func.func @transform_6(%arg0: i32) -> (i32, i32, i32) {
    %c0_i32 = arith.constant 0 : i32
    %c0_i32_0 = arith.constant 0 : i32
    %c0_i32_1 = arith.constant 0 : i32
    %c0_i32_2 = arith.constant 0 : i32
    return %c0_i32, %c0_i32_0, %c0_i32_1 : i32, i32, i32
  }
  func.func @transform_7(%arg0: i32) -> (i32, i32) {
    %c0_i32 = arith.constant 0 : i32
    %c0_i32_0 = arith.constant 0 : i32
    %c0_i32_1 = arith.constant 0 : i32
    return %c0_i32, %c0_i32_0 : i32, i32
  }
  func.func @transform_8(%arg0: i32) -> (i32, i32) {
    %c0_i32 = arith.constant 0 : i32
    %c0_i32_0 = arith.constant 0 : i32
    %c0_i32_1 = arith.constant 0 : i32
    return %c0_i32, %c0_i32_0 : i32, i32
  }
  func.func @transform_9(%arg0: i32) -> (i32, i32) {
    %c0_i32 = arith.constant 0 : i32
    %c0_i32_0 = arith.constant 0 : i32
    %c0_i32_1 = arith.constant 0 : i32
    return %c0_i32, %c0_i32_0 : i32, i32
  }
  func.func @transform_10(%arg0: i32) -> (i32, i32) {
    %c0_i32 = arith.constant 0 : i32
    %c0_i32_0 = arith.constant 0 : i32
    %c0_i32_1 = arith.constant 0 : i32
    return %c0_i32, %c0_i32_0 : i32, i32
  }
  func.func @transform_11(%arg0: i32) -> (i32, i32) {
    %c0_i32 = arith.constant 0 : i32
    %c0_i32_0 = arith.constant 0 : i32
    %c0_i32_1 = arith.constant 0 : i32
    return %c0_i32, %c0_i32_0 : i32, i32
  }
  func.func @transform_12(%arg0: i32) -> (i32, i32) {
    %c0_i32 = arith.constant 0 : i32
    %c0_i32_0 = arith.constant 0 : i32
    %c0_i32_1 = arith.constant 0 : i32
    return %c0_i32, %c0_i32_0 : i32, i32
  }
  func.func @transform_13(%arg0: i32) -> (i32, i32) {
    %c0_i32 = arith.constant 0 : i32
    %c0_i32_0 = arith.constant 0 : i32
    %c0_i32_1 = arith.constant 0 : i32
    return %c0_i32, %c0_i32_0 : i32, i32
  }
  func.func @transform_14(%arg0: i32) -> (i32, i32) {
    %c0_i32 = arith.constant 0 : i32
    %c0_i32_0 = arith.constant 0 : i32
    %c0_i32_1 = arith.constant 0 : i32
    return %c0_i32, %c0_i32_0 : i32, i32
  }
  func.func @transform_15(%arg0: i32) -> (i32, i32) {
    %c0_i32 = arith.constant 0 : i32
    %c0_i32_0 = arith.constant 0 : i32
    %c0_i32_1 = arith.constant 0 : i32
    return %c0_i32, %c0_i32_0 : i32, i32
  }
  func.func @transform_16(%arg0: i32) -> (i32, i32) {
    %c0_i32 = arith.constant 0 : i32
    %c0_i32_0 = arith.constant 0 : i32
    %c0_i32_1 = arith.constant 0 : i32
    return %c0_i32, %c0_i32_0 : i32, i32
  }
}

</mosaic_0001>

<bundles_post_ra>
// kernel: llama2_ad_forward.1
= control target key start
LH: loop header
LB: loop body
LE: loop exit
PB: predicated region body
PF: predicated region fallthrough
CT: control target
= control target key end

     0   :  { %s3935_s0 = inlined_call_operand.vmem [shape: f32[16,128], index: 0, kind: input, shape index: {}]   ;;  %s3936_s1 = inlined_call_operand.hbm [shape: f32[4,1,128], index: 1, kind: input, shape index: {}]   ;;  %s3937_s2 = inlined_call_operand.hbm [shape: bf16[4,128,640], index: 2, kind: input, shape index: {}]   ;;  %s3938_s3 = inlined_call_operand.vmem [shape: bf16[4,128,128], index: 3, kind: input, shape index: {}]   ;;  %s3939_s4 = inlined_call_operand.hbm [shape: f32[4,1,128], index: 4, kind: input, shape index: {}]   ;;  %s3940_s5 = inlined_call_operand.hbm [shape: bf16[4,128,512], index: 5, kind: input, shape index: {}]   ;;  %s3941_s6 = inlined_call_operand.hbm [shape: bf16[4,256,128], index: 6, kind: input, shape index: {}]   ;;  %s3942_s7 = inlined_call_operand.hbm [shape: f32[16,128], index: 7, kind: input, shape index: {}]   ;;  %s3943_s8 = inlined_call_operand.vmem [shape: f32[16,128], index: 8, kind: input, shape index: {}]   ;;  %s3944_s9 = inlined_call_operand.vmem [shape: f32[16,16], index: 9, kind: input, shape index: {}]   ;;  %s3945_s10 = inlined_call_operand.vmem [shape: f32[1,128], index: 10, kind: input, shape index: {}]   ;;  %s3946_s11 = inlined_call_operand.vmem [shape: bf16[32,8], index: 11, kind: input, shape index: {}]   ;;  %s3947_s12 = inlined_call_operand.vmem [shape: f32[1,8], index: 12, kind: input, shape index: {}]   ;;  %s3948_s13 = inlined_call_operand.vmem [shape: f32[16,8], index: 13, kind: input, shape index: {}]   ;;  %s3949_s14 = inlined_call_operand.vmem [shape: f32[16,8], index: 14, kind: input, shape index: {}]   ;;  %s3950_s15 = inlined_call_operand.vmem [shape: f32[16,8], index: 15, kind: input, shape index: {}]   ;;  %s3951_s16 = inlined_call_operand.vmem [shape: f32[16,128], index: 16, kind: output, shape index: {}]  }
   0x1   :  { %3958 = sst [smem:[#allocation16_spill]] %s3935_s0 }
   0x2   :  { %3959 = sst [smem:[#allocation17_spill]] %s3937_s2 }
   0x3   :  { %3960 = sst [smem:[#allocation18_spill]] %s3947_s12 }
   0x4   :  { %3961 = sst [smem:[#allocation19_spill]] %s3948_s13 }
   0x5   :  { %3962 = sst [smem:[#allocation20_spill]] %s3949_s14 }
   0x6   :  { %3963 = sst [smem:[#allocation21_spill]] %s3950_s15 }
   0x7   :  { %21 = vsyncpa [#allocation3], 0 }
   0x8   :  { %22 = vsyncpa [#allocation5], 0 }
   0x9   :  { %23 = vsyncpa [#allocation8], 0 }
   0xa   :  { %24 = vsyncpa [#allocation11], 0  ;;  %s3408_s21 = smov 0  }
   0xb LB: > { %s3299_s22 = smov [#allocation4]   ;;  %s3414_s24 = sadd.s32 4294967295, %s3297_s21   ;;  %s3297_s21 = sphi %s3408_s21, %s30_s21  }
   0xc   : > { %s420_s23 = sshll.u32 %s3299_s22, 4  ;;  %p2499_p0 = scmp.ge.s32.totalorder %s3297_s21, 1  ;;  %s3420_s23 = int_to_ptr.vmem [resolvable:$true] %s420_s23 }
   0xd   : > { %p392_p1 = scmp.lt.s32.totalorder %s3297_s21, 5  ;;  %p3956_p3 = scmp.eq.s32.totalorder %s3414_s24, 0 }
   0xe   : > { %s3300_s26 = smov [#allocation7]   ;;  %s3301_s29 = smov [#allocation2]  }
   0xf   : > { %p3422_p4 = pnand %p2499_p0, %p392_p1  ;;  %s449_s27 = sshll.u32 %s3300_s26, 4  ;;  %s3434_s27 = int_to_ptr.vmem [resolvable:$true] %s449_s27 }
  0x10   : > { %s3436_s30 = sshll.u32 %s3301_s29, 4  ;;  %s3966_s2 = sld [smem:[#allocation17_spill]]  ;;  %s408_s30 = int_to_ptr.vmem [resolvable:$true] %s3436_s30 }
  0x11   : > { %s3964_s25 = scalar_select %p3422_p4, 1, 0 }
  0x12   : > { %p2852_p5 = pneg %p3422_p4 }
  0x14   : > { %p3430_p6 = pnand %p3956_p3, %p2852_p5 }
  0x16   : > { %s3107_s18 = scalar_lea.hbm %s3966_s2, 20480  ;;  %p3446_p8 = pneg %p3430_p6 }
  0x17   : > { %p3108_p7 = scmp.ne.s32.totalorder %s3966_s2, %s3107_s18  ;;  %p3114_p11 = scmp.lt.u32.totalorder %s3107_s18, %s3966_s2 }
  0x19   : > { %p3110_p9 = pnand %p3446_p8, %p3108_p7 }
  0x1b   : > { %p3111_p10 = pneg %p3110_p9 }
  0x1d   : > { %p3116_p12 = pnand %p3114_p11, %p3111_p10 }
  0x1f   : > { %3119 = shalt.err (!%p3116_p12)
}
  0x20   : > { %s3120_s0 = scalar_lea.vmem %s3420_s23, 20480  ;;  %p3128_p5 = scmp.lt.s32.totalorder %s3420_s23, %s3420_s23 }
  0x21   : > { %p3121_p13 = scmp.ne.s32.totalorder %s3420_s23, %s3120_s0  ;;  %p3129_p2 = scmp.lt.s32.totalorder %s3120_s0, %s3120_s0 }
  0x23   : > { %p3123_p0 = pnand %p3121_p13, %p3446_p8  ;;  %p3130_p7 = por %p3129_p2, %p3128_p5 }
  0x25   : > { %p3124_p1 = pneg %p3123_p0 }
  0x27   : > { %p3131_p9 = pnand %p3130_p7, %p3124_p1 }
  0x29   : > { %3134 = shalt.err (!%p3131_p9)
}
  0x2a   : > { %s3302_s17 = smov 320   ;;  %s3303_s18 = smov 20  }
  0x2b   : > { %2858 = dma.hbm_to_vmem [thread:$0]  (!%p3430_p6), %s3966_s2, 20480, %s3420_s23, [#allocation5], %s3302_s17, %s3302_s17, %s3303_s18  }
  0x2c   : > { %s3135_s13 = scalar_lea.hbm %s3940_s5, 16384 }
  0x2d   : > { %p3136_p2 = scmp.ne.s32.totalorder %s3940_s5, %s3135_s13  ;;  %p3142_p12 = scmp.lt.u32.totalorder %s3135_s13, %s3940_s5 }
  0x2f   : > { %p3138_p10 = pnand %p3136_p2, %p3446_p8 }
  0x31   : > { %p3139_p11 = pneg %p3138_p10 }
  0x33   : > { %p3144_p13 = pnand %p3142_p12, %p3139_p11 }
  0x35   : > { %3147 = shalt.err (!%p3144_p13)
}
  0x36   : > { %s3148_s23 = scalar_lea.vmem %s3434_s27, 16384  ;;  %p3156_p7 = scmp.lt.s32.totalorder %s3434_s27, %s3434_s27 }
  0x37   : > { %p3149_p0 = scmp.ne.s32.totalorder %s3434_s27, %s3148_s23  ;;  %p3157_p9 = scmp.lt.s32.totalorder %s3148_s23, %s3148_s23 }
  0x39   : > { %p3151_p1 = pnand %p3149_p0, %p3446_p8  ;;  %p3158_p2 = por %p3157_p9, %p3156_p7 }
  0x3b   : > { %p3152_p5 = pneg %p3151_p1 }
  0x3d   : > { %p3159_p10 = pnand %p3158_p2, %p3152_p5 }
  0x3f   : > { %3162 = shalt.err (!%p3159_p10)
}
  0x40   : > { %s3304_s14 = smov 256   ;;  %s3305_s12 = smov 16  }
  0x41   : > { %2864 = dma.hbm_to_vmem [thread:$0]  (!%p3430_p6), %s3940_s5, 16384, %s3434_s27, [#allocation8], %s3304_s14, %s3304_s14, %s3305_s12  }
  0x42   : > { %s3163_s19 = scalar_lea.hbm %s3936_s1, 64 }
  0x43   : > { %p3164_p11 = scmp.ne.s32.totalorder %s3936_s1, %s3163_s19  ;;  %p3170_p0 = scmp.lt.u32.totalorder %s3163_s19, %s3936_s1 }
  0x45   : > { %p3166_p12 = pnand %p3164_p11, %p3446_p8 }
  0x47   : > { %p3167_p13 = pneg %p3166_p12 }
  0x49   : > { %p3172_p1 = pnand %p3170_p0, %p3167_p13 }
  0x4b   : > { %3175 = shalt.err (!%p3172_p1)
}
  0x4c   : > { %s3176_s23 = scalar_lea.vmem %s408_s30, 64  ;;  %p3184_p2 = scmp.lt.s32.totalorder %s408_s30, %s408_s30 }
  0x4d   : > { %p3177_p5 = scmp.ne.s32.totalorder %s408_s30, %s3176_s23  ;;  %p3185_p10 = scmp.lt.s32.totalorder %s3176_s23, %s3176_s23 }
  0x4f   : > { %p3179_p7 = pnand %p3177_p5, %p3446_p8  ;;  %p3186_p3 = por %p3185_p10, %p3184_p2 }
  0x51   : > { %p3180_p9 = pneg %p3179_p7 }
  0x53   : > { %p3187_p4 = pnand %p3186_p3, %p3180_p9 }
  0x55   : > { %3190 = shalt.err (!%p3187_p4)
}
  0x56   : > { %s3306_s27 = smov 1   ;;  %s3307_s15 = smov [#allocation6]  }
  0x57   : > { %2855 = dma.hbm_to_vmem [thread:$0]  (!%p3430_p6), %s3936_s1, 64, %s408_s30, [#allocation3], %s3305_s12, %s3305_s12, %s3306_s27  }
  0x58   : > { %s436_s17 = sshll.u32 %s3307_s15, 4  ;;  %s3308_s18 = smov [#allocation9]   ;;  %s437_s17 = int_to_ptr.vmem [resolvable:$true] %s436_s17 }
  0x59   : > { %s462_s19 = sshll.u32 %s3308_s18, 4  ;;  %s3191_s29 = scalar_lea.hbm %s3939_s4, 64  ;;  %s463_s19 = int_to_ptr.vmem [resolvable:$true] %s462_s19 }
  0x5a   : > { %p3192_p3 = scmp.ne.s32.totalorder %s3939_s4, %s3191_s29  ;;  %p3198_p12 = scmp.lt.u32.totalorder %s3191_s29, %s3939_s4 }
  0x5c   : > { %p3194_p4 = pnand %p3192_p3, %p3446_p8 }
  0x5e   : > { %p3195_p11 = pneg %p3194_p4 }
  0x60   : > { %p3200_p13 = pnand %p3198_p12, %p3195_p11 }
  0x62   : > { %3203 = shalt.err (!%p3200_p13)
}
  0x63   : > { %s3204_s30 = scalar_lea.vmem %s437_s17, 64  ;;  %p3212_p7 = scmp.lt.s32.totalorder %s437_s17, %s437_s17 }
  0x64   : > { %p3205_p0 = scmp.ne.s32.totalorder %s437_s17, %s3204_s30  ;;  %p3213_p9 = scmp.lt.s32.totalorder %s3204_s30, %s3204_s30 }
  0x66   : > { %p3207_p1 = pnand %p3205_p0, %p3446_p8  ;;  %p3214_p2 = por %p3213_p9, %p3212_p7 }
  0x68   : > { %p3208_p5 = pneg %p3207_p1 }
  0x6a   : > { %p3215_p10 = pnand %p3214_p2, %p3208_p5 }
  0x6c   : > { %3218 = shalt.err (!%p3215_p10)
}
  0x6d   : > { %2861 = dma.hbm_to_vmem [thread:$0]  (!%p3430_p6), %s3939_s4, 64, %s437_s17, [#allocation5], %s3305_s12, %s3305_s12, %s3306_s27  }
  0x6e   : > { %s3219_s20 = scalar_lea.hbm %s3941_s6, 8192 }
  0x6f   : > { %p3220_p3 = scmp.ne.s32.totalorder %s3941_s6, %s3219_s20  ;;  %p3226_p12 = scmp.lt.u32.totalorder %s3219_s20, %s3941_s6 }
  0x71   : > { %p3222_p4 = pnand %p3220_p3, %p3446_p8 }
  0x73   : > { %p3223_p11 = pneg %p3222_p4 }
  0x75   : > { %p3228_p13 = pnand %p3226_p12, %p3223_p11 }
  0x77   : > { %3231 = shalt.err (!%p3228_p13)
}
  0x78   : > { %s3232_s14 = scalar_lea.vmem %s463_s19, 8192  ;;  %p3240_p7 = scmp.lt.s32.totalorder %s463_s19, %s463_s19 }
  0x79   : > { %p3233_p0 = scmp.ne.s32.totalorder %s463_s19, %s3232_s14  ;;  %p3241_p9 = scmp.lt.s32.totalorder %s3232_s14, %s3232_s14 }
  0x7b   : > { %p3235_p1 = pnand %p3233_p0, %p3446_p8  ;;  %p3242_p2 = por %p3241_p9, %p3240_p7 }
  0x7d   : > { %p3236_p5 = pneg %p3235_p1 }
  0x7f   : > { %p3243_p10 = pnand %p3242_p2, %p3236_p5 }
  0x81   : > { %3246 = shalt.err (!%p3243_p10)
}
  0x82   : > { %s3309_s12 = smov 64   ;;  %s3310_s27 = smov 4  }
  0x83   : > { %2867 = dma.hbm_to_vmem [thread:$0]  (!%p3430_p6), %s3941_s6, 8192, %s463_s19, [#allocation8], %s3309_s12, %s3309_s12, %s3310_s27  }
  0x84   : > { %s3311_s13 = smov [#allocation10]   ;;  %s3247_s20 = scalar_lea.hbm %s3942_s7, 256 }
  0x85   : > { %s475_s2 = sshll.u32 %s3311_s13, 4  ;;  %p3248_p3 = scmp.ne.s32.totalorder %s3942_s7, %s3247_s20  ;;  %s476_s2 = int_to_ptr.vmem [resolvable:$true] %s475_s2 }
  0x86   : > { %p3254_p12 = scmp.lt.u32.totalorder %s3247_s20, %s3942_s7 }
  0x87   : > { %p3250_p4 = pnand %p3248_p3, %p3446_p8 }
  0x89   : > { %p3251_p11 = pneg %p3250_p4 }
  0x8b   : > { %p3256_p13 = pnand %p3254_p12, %p3251_p11 }
  0x8d   : > { %3259 = shalt.err (!%p3256_p13)
}
  0x8e   : > { %s3260_s19 = scalar_lea.vmem %s476_s2, 256  ;;  %p3268_p7 = scmp.lt.s32.totalorder %s476_s2, %s476_s2 }
  0x8f   : > { %p3261_p0 = scmp.ne.s32.totalorder %s476_s2, %s3260_s19  ;;  %p3269_p9 = scmp.lt.s32.totalorder %s3260_s19, %s3260_s19 }
  0x91   : > { %p3263_p1 = pnand %p3261_p0, %p3446_p8  ;;  %p3270_p2 = por %p3269_p9, %p3268_p7 }
  0x93   : > { %p3264_p5 = pneg %p3263_p1 }
  0x95   : > { %p3271_p10 = pnand %p3270_p2, %p3264_p5 }
  0x97   : > { %3274 = shalt.err (!%p3271_p10)
}
  0x98   : > { %s3312_s14 = smov 128   ;;  %s3313_s12 = smov 8  }
  0x99   : > { %2870 = dma.hbm_to_vmem [thread:$0]  (!%p3430_p6), %s3942_s7, 256, %s476_s2, [#allocation11], %s3312_s14, %s3312_s14, %s3313_s12  }
  0x9a   : > { %p3968_p3 = scmp.ne.s32.totalorder %s3964_s25, 0 }
  0x9b   : > { %p3969_p4 = scmp.eq.s32.totalorder (!%p3968_p3), %s3414_s24, 0 }
  0x9c   : > { %515 = sbr.rel (%p3968_p3) target bundleno = 4619 (0x120b), region = 84 }
  0xa3   : > { %3280 = dma.done.wait (%p3969_p4), [#allocation3], 64   ;;  %p3970_p8 = pmov %p3969_p4 }
  0xa4   : > { %p3971_p11 = pmov %p3969_p4 }
  0xa5   : > { %3282 = vsyncadd (%p3970_p8), [#allocation3], 4294967232 }
  0xa6   : > { %3284 = dma.done.wait (%p3971_p11), [#allocation5], 20544   ;;  %p3972_p12 = pmov %p3969_p4 }
  0xa7   : > { %p3973_p13 = pmov %p3969_p4 }
  0xa8   : > { %3286 = vsyncadd (%p3972_p12), [#allocation5], 4294946752 }
  0xa9   : > { %3288 = dma.done.wait (%p3973_p13), [#allocation8], 24576   ;;  %p3974_p6 = pmov %p3969_p4 }
  0xaa   : > { %p3975_p0 = pmov %p3969_p4 }
  0xab   : > { %3290 = vsyncadd (%p3974_p6), [#allocation8], 4294942720 }
  0xac   : > { %3292 = dma.done.wait (%p3975_p0), [#allocation11], 256   ;;  %p3976_p1 = pmov %p3975_p0 }
  0xad   : > { %p3977_p5 = scmp.ne.s32.totalorder %s3414_s24, 0 }
  0xae   : > { %3294 = vsyncadd (%p3976_p1), [#allocation11], 4294967040  ;;  %s3978_s22 = sld [smem:[#allocation16_spill]] (!%p3977_p5) }
  0xaf   : > { %579 = sbr.rel (%p3977_p5) target bundleno = 182 (0xb6), region = 112 }
  0xb4   : > { %v580_v0 = vld [vmem:[%s3978_s22] sm:$0xff] (!%p3977_p5)  ;;  %v581_v1 = vld [vmem:[%s3978_s22 + $0x8] sm:$0xff] (!%p3977_p5) }
  0xb5   : > { %582 = vst [vmem:[%s3951_s16] sm:$0xff] (!%p3977_p5), %v580_v0  ;;  %583 = vst [vmem:[%s3951_s16 + $0x8] sm:$0xff] (!%p3977_p5), %v581_v1 }
  0xb6 PF: > { %s2650_s19 = smul.u32 320, %s3414_s24  ;;  %v3314_v33 = vmov 0   ;;  %v3315_v39 = vmov 0.0   ;;  %s2646_s12 = scalar_lea.vmem [#allocation2], %s3297_s21  ;;  %vm3316_vm0 = vmmov 0   ;;  %v998_v62 = vld [vmem:[#allocation10] sm:$0xff] }
  0xb7   : > { %903 = vmatprep.mubr.bf16.mxu0 %v3314_v33  ;;  %946 = vmatprep.mubr.bf16.mxu1 %v3314_v33  ;;  %v2649_v49 = vld [vmem:[%s2646_s12 - $0x1] ss:$0 sm:$0xff]  ;;  %v1000_v63 = vld [vmem:[%s3943_s8] sm:$0xff]  ;;  %vm1040_vm1 = vcmask 261120   ;;  %vm1088_vm2 = vcmask 130048   ;;  %s3317_s18 = smov 96  }
  0xb8   : > { %s3615_s14 = scalar_lea.vmem [#allocation4], %s2650_s19  ;;  %s3318_s20 = smov 64  }
  0xb9   : > { %v2915_v6 = vld [vmem:[%s3615_s14 + $0x4] ss:$20 sps:$4 sm:$0xff]   ;;  %v2917_v7 = vld [vmem:[%s3615_s14] ss:$20 sps:$4 sm:$0xff]   ;;  %v2920_v9 = vld [vmem:[%s3615_s14 + $0x8] ss:$20 sps:$4 sm:$0xff]  }
  0xba   : > { %871 = vmatprep.subr.bf16.mxu0 %v2915_v6  ;;  %v2918_v8 = vld [vmem:[%s3615_s14 + $0xc] ss:$20 sps:$4 sm:$0xff]   ;;  %v2923_v11 = vld [vmem:[%s3615_s14 + $0x28] ss:$20 sps:$4 sm:$0xff]   ;;  %v2926_v13 = vld [vmem:[%s3615_s14 + $0x30] ss:$20 sps:$4 sm:$0xff]  }
  0xbb   : > { %872 = vmatpush1.bf16.msra.mxu0 %v2917_v7  ;;  %v2921_v10 = vld [vmem:[%s3615_s14 + $0x2c] ss:$20 sps:$4 sm:$0xff]   ;;  %914 = vmatprep.subr.bf16.mxu1 %v2918_v8  ;;  %v2924_v12 = vld [vmem:[%s3615_s14 + $0x34] ss:$20 sps:$4 sm:$0xff]   ;;  %v2929_v15 = vld [vmem:[%s3615_s14 + $0x50] ss:$20 sps:$4 sm:$0xff]  }
  0xbc   : > { %v3603_v2 = vld [vmem:[%s3951_s16] sm:$0xff]  ;;  %v3608_v3 = vld [vmem:[%s3951_s16 + $0x8] sm:$0xff]  ;;  %915 = vmatpush1.bf16.msra.mxu1 %v2920_v9  ;;  %873 = vmatprep.subr.bf16.mxu0 %v2921_v10  ;;  %v2930_v16 = vld [vmem:[%s3615_s14 + $0x5c] ss:$20 sps:$4 sm:$0xff]   ;;  %s2651_s26 = sshll.u32 %s3414_s24, 6  ;;  %s3319_s19 = smov 32  }
  0xbd   : > { %v588_v4 = vmul.f32 %v3603_v2, %v3603_v2  ;;  %v589_v5 = vmul.f32 %v3608_v3, %v3608_v3  ;;  %916 = vmatprep.subr.bf16.mxu1 %v2924_v12  ;;  %v2927_v14 = vld [vmem:[%s3615_s14 + $0x54] ss:$20 sps:$4 sm:$0xff]   ;;  %v2932_v17 = vld [vmem:[%s3615_s14 + $0x58] ss:$20 sps:$4 sm:$0xff]   ;;  %v2933_v18 = vld [vmem:[%s3615_s14 + $0x7c] ss:$20 sps:$4 sm:$0xff]   ;;  %s3749_s23 = scalar_lea.vmem %s3938_s3, %s2651_s26 }
  0xbe   : > { %v2935_v19 = vld [vmem:[%s3615_s14 + $0x78] ss:$20 sps:$4 sm:$0xff]   ;;  %v2938_v21 = vld [vmem:[%s3615_s14 + $0x80] ss:$20 sps:$4 sm:$0xff]   ;;  %v2944_v25 = vld [vmem:[%s3615_s14 + $0xa8] ss:$20 sps:$4 sm:$0xff]  }
  0xbf   : > { %590 = vadd.xlane.f32.xlu0 %v588_v4  ;;  %874 = vmatpush1.bf16.msra.mxu0 %v2923_v11  ;;  %v2936_v20 = vld [vmem:[%s3615_s14 + $0x84] ss:$20 sps:$4 sm:$0xff]   ;;  %v2941_v23 = vld [vmem:[%s3615_s14 + $0xa0] ss:$20 sps:$4 sm:$0xff]   ;;  %v2947_v27 = vld [vmem:[%s3615_s14 + $0xc8] ss:$20 sps:$4 sm:$0xff]  }
  0xc0   : > { %917 = vmatpush1.bf16.msra.mxu1 %v2926_v13  ;;  %875 = vmatprep.subr.bf16.mxu0 %v2927_v14  ;;  %v2939_v22 = vld [vmem:[%s3615_s14 + $0xa4] ss:$20 sps:$4 sm:$0xff]   ;;  %v2942_v24 = vld [vmem:[%s3615_s14 + $0xac] ss:$20 sps:$4 sm:$0xff]   ;;  %v2948_v28 = vld [vmem:[%s3615_s14 + $0xd4] ss:$20 sps:$4 sm:$0xff]  }
  0xc1   : > { %918 = vmatprep.subr.bf16.mxu1 %v2930_v16  ;;  %v2945_v26 = vld [vmem:[%s3615_s14 + $0xcc] ss:$20 sps:$4 sm:$0xff]   ;;  %v2950_v29 = vld [vmem:[%s3615_s14 + $0xd0] ss:$20 sps:$4 sm:$0xff]   ;;  %v2951_v30 = vld [vmem:[%s3615_s14 + $0xf4] ss:$20 sps:$4 sm:$0xff]  }
  0xc2   : > { %v2954_v31 = vld [vmem:[%s3615_s14 + $0xfc] ss:$20 sps:$4 sm:$0xff]   ;;  %v2956_v34 = vld [vmem:[%s3615_s14 + $0xf8] ss:$20 sps:$4 sm:$0xff]   ;;  %v2962_v38 = vld [vmem:[%s3615_s14 + $0x120] ss:$20 sps:$4 sm:$0xff]  }
  0xc3   : > { %592 = vadd.xlane.f32.xlu0 %v589_v5  ;;  %876 = vmatpush1.bf16.msra.mxu0 %v2929_v15  ;;  %v2953_v32 = vld [vmem:[%s3615_s14 + $0xf0] ss:$20 sps:$4 sm:$0xff]   ;;  %v2959_v37 = vld [vmem:[%s3615_s14 + $0x118] ss:$20 sps:$4 sm:$0xff]   ;;  %v2965_v56 = vld [vmem:[%s3615_s14 + $0x60] ss:$20 sps:$4 sm:$0xff]  }
  0xc4   : > { %919 = vmatpush1.bf16.msra.mxu1 %v2932_v17  ;;  %877 = vmatprep.subr.bf16.mxu0 %v2933_v18  ;;  %v2957_v35 = vld [vmem:[%s3615_s14 + $0x11c] ss:$20 sps:$4 sm:$0xff]   ;;  %v2960_v36 = vld [vmem:[%s3615_s14 + $0x124] ss:$20 sps:$4 sm:$0xff]   ;;  %v2969_v60 = vld [vmem:[%s3615_s14 + $0x100] ss:$20 sps:$4 sm:$0xff]  }
  0xc5   : > { %920 = vmatprep.subr.bf16.mxu1 %v2936_v20  ;;  %v2963_v53 = vld [vmem:[%s3615_s14 + $0x10] ss:$20 sps:$4 sm:$0xff]   ;;  %v2964_v55 = vld [vmem:[%s3615_s14 + $0x38] ss:$20 sps:$4 sm:$0xff]   ;;  %v2966_v57 = vld [vmem:[%s3615_s14 + $0x88] ss:$20 sps:$4 sm:$0xff]  }
  0xc6   : > { %v2967_v58 = vld [vmem:[%s3615_s14 + $0xb0] ss:$20 sps:$4 sm:$0xff]   ;;  %v2968_v59 = vld [vmem:[%s3615_s14 + $0xd8] ss:$20 sps:$4 sm:$0xff]   ;;  %v2970_v61 = vld [vmem:[%s3615_s14 + $0x128] ss:$20 sps:$4 sm:$0xff]  }
  0xc7   : > { %878 = vmatpush1.bf16.msra.mxu0 %v2935_v19  ;;  %v1001_v6 = vld [vmem:[%s3943_s8 + $0x8] sm:$0xff]  ;;  %s2656_s14 = sshll.u32 %s3414_s24, 8  ;;  %s2652_s30 = scalar_lea.vmem [#allocation6], %s3297_s21 }
  0xc8   : > { %921 = vmatpush1.bf16.msra.mxu1 %v2938_v21  ;;  %879 = vmatprep.subr.bf16.mxu0 %v2939_v22  ;;  %s3827_s12 = scalar_lea.vmem [#allocation7], %s2656_s14  ;;  %s2657_s13 = sshll.u32 %s3414_s24, 7 }
  0xc9   : > { %922 = vmatprep.subr.bf16.mxu1 %v2942_v24  ;;  %s2098_s2 = scalar_lea.vmem [#allocation9], %s2657_s13  ;;  %p2637_p7 = scmp.ge.s32.totalorder %s3414_s24, 3 }
  0xcb   : > { %880 = vmatpush1.bf16.msra.mxu0 %v2941_v23 }
  0xcc   : > { %923 = vmatpush1.bf16.msra.mxu1 %v2944_v25  ;;  %881 = vmatprep.subr.bf16.mxu0 %v2945_v26 }
  0xcd   : > { %924 = vmatprep.subr.bf16.mxu1 %v2948_v28 }
  0xcf   : > { %882 = vmatpush1.bf16.msra.mxu0 %v2947_v27 }
  0xd0   : > { %925 = vmatpush1.bf16.msra.mxu1 %v2950_v29  ;;  %883 = vmatprep.subr.bf16.mxu0 %v2951_v30 }
  0xd1   : > { %926 = vmatprep.subr.bf16.mxu1 %v2954_v31 }
  0xd3   : > { %884 = vmatpush1.bf16.msra.mxu0 %v2953_v32  ;;  %v3702_v32 = vld [vmem:[%s3944_s9] sm:$0xff] }
  0xd4   : > { %927 = vmatpush1.bf16.msra.mxu1 %v2956_v34  ;;  %885 = vmatprep.subr.bf16.mxu0 %v2957_v35  ;;  %v3707_v35 = vld [vmem:[%s3944_s9 + $0x8] sm:$0xff] }
  0xd5   : > { %928 = vmatprep.subr.bf16.mxu1 %v2960_v36 }
  0xd7   : > { %886 = vmatpush1.bf16.msra.mxu0 %v2959_v37 }
  0xd8   : > { %929 = vmatpush1.bf16.msra.mxu1 %v2962_v38  ;;  %2720 = vmatprep.subr.bf16.mxu0 %v3315_v39 }
  0xd9   : > { %2740 = vmatprep.subr.bf16.mxu1 %v3315_v39 }
 0x14c   : > { %v591_v40 = vpop.xlane.xlu0 %590 }
 0x14d   : > { %v595_v41 = vmul.f32 0.0078125, %v591_v40 }
 0x14f   : > { %v597_v42 = vadd.f32 1e-06, %v595_v41 }
 0x150   : > { %v593_v43 = vpop.xlane.xlu0 %592 }
 0x151   : > { %3043 = vrsqrt.f32 %v597_v42  ;;  %v596_v44 = vmul.f32 0.0078125, %v593_v43 }
 0x153   : > { %v598_v45 = vadd.f32 1e-06, %v596_v44 }
 0x155   : > { %3045 = vrsqrt.f32 %v598_v45 }
 0x15b   : > { %v3044_v46 = vpop.eup %3043 }
 0x15c   : > { %v601_v47 = vmul.f32 %v3044_v46, %v3603_v2  ;;  %v999_v2 = vld [vmem:[#allocation10 + $0x8] sm:$0xff] }
 0x15e   : > { %v609_v51 = vmul.f32 %v2649_v49, %v601_v47 }
 0x15f   : > { %v3046_v48 = vpop.eup %3045 }
 0x160   : > { %v602_v50 = vmul.f32 %v3046_v48, %v3608_v3 }
 0x162   : > { %v610_v52 = vmul.f32 %v2649_v49, %v602_v50 }
 0x164   : > { %v611_v54 = vpack.c.bf16 %v610_v52, %v609_v51 }
 0x166   : > { %904 = vmatmul.mubr.bf16.vlgmr.msra.gmra.mrb[0].mxu0 %v611_v54  ;;  %947 = vmatmul.mubr.bf16.vlgmr.msra.gmra.mrb[0].mxu1 %v611_v54 }
 0x167   : > { %2721 = vmatpush3.bf16.msra.mxu0 %v2963_v53  ;;  %2736 = vmatprep.mubr.msk.bf16.mxu0 %vm3316_vm0, %v3315_v39 }
 0x168   : > { %2722 = vmatprep.subr.bf16.mxu0 %v3315_v39  ;;  %2742 = vmatprep.mubr.msk.bf16.mxu1 %vm3316_vm0, %v3315_v39 }
 0x16b   : > { %2723 = vmatpush3.bf16.msra.mxu0 %v2964_v55 }
 0x16c   : > { %2724 = vmatprep.subr.bf16.mxu0 %v3315_v39 }
 0x16f   : > { %2725 = vmatpush3.bf16.msra.mxu0 %v2965_v56 }
 0x170   : > { %2726 = vmatprep.subr.bf16.mxu0 %v3315_v39 }
 0x173   : > { %2727 = vmatpush3.bf16.msra.mxu0 %v2966_v57 }
 0x174   : > { %2728 = vmatprep.subr.bf16.mxu0 %v3315_v39 }
 0x177   : > { %2729 = vmatpush3.bf16.msra.mxu0 %v2967_v58 }
 0x178   : > { %2730 = vmatprep.subr.bf16.mxu0 %v3315_v39 }
 0x17b   : > { %2731 = vmatpush3.bf16.msra.mxu0 %v2968_v59 }
 0x17c   : > { %2732 = vmatprep.subr.bf16.mxu0 %v3315_v39 }
 0x17f   : > { %2733 = vmatpush3.bf16.msra.mxu0 %v2969_v60 }
 0x180   : > { %2734 = vmatprep.subr.bf16.mxu0 %v3315_v39 }
 0x183   : > { %2735 = vmatpush3.bf16.msra.mxu0 %v2970_v61 }
 0x184   : > { %2792 = vmatprep.subr.bf16.mxu0 %v3315_v39 }
 0x186   : > { %2737 = vmatmul.mubr.bf16.vlgmr.msra.gmra.mrb[4].mxu0 %v611_v54 }
 0x187   : > { %2796 = vmatprep.mubr.msk.bf16.mxu0 %vm3316_vm0, %v3315_v39 }
 0x239   : > { %v905_v0 = vpop.f32.mrb[0].mxu0  ;;  %v948_v1 = vpop.f32.mrb[0].mxu1 }
 0x23a   : > { %v1002_v3 = vmul.f32 %v998_v62, %v905_v0  ;;  %v907_v4 = vpop.f32.mrb[1].mxu0  ;;  %v950_v5 = vpop.f32.mrb[1].mxu1 }
 0x23b   : > { %v1004_v7 = vmul.f32 %v1000_v63, %v950_v5  ;;  %v909_v8 = vpop.f32.mrb[2].mxu0  ;;  %v952_v9 = vpop.f32.mrb[2].mxu1  ;;  %v1010_v21 = vmul.f32 %v998_v62, %v907_v4 }
 0x23c   : > { %v1003_v10 = vmul.f32 %v999_v2, %v909_v8  ;;  %v3684_v11 = vpack.c.bf16 %v952_v9, %v948_v1  ;;  %v911_v12 = vpop.f32.mrb[3].mxu0  ;;  %v954_v13 = vpop.f32.mrb[3].mxu1 }
 0x23d   : > { %v1006_v14 = vadd.f32 %v1004_v7, %v1002_v3  ;;  %v1005_v15 = vmul.f32 %v1001_v6, %v954_v13  ;;  %v1011_v25 = vmul.f32 %v999_v2, %v911_v12 }
 0x23f   : > { %v1007_v16 = vadd.f32 %v1005_v15, %v1003_v10  ;;  %v1008_v17 = vmul.f32 0.17677669, %v1006_v14 }
 0x241   : > { %v1009_v18 = vmul.f32 0.17677669, %v1007_v16 }
 0x243   : > { %v3686_v19 = vpack.c.bf16 %v1009_v18, %v1008_v17 }
 0x259   : > { %v991_v20 = vpop.f32.mrb[4].mxu0 }
 0x25a   : > { %v1012_v22 = vmul.f32 %v1000_v63, %v991_v20  ;;  %v2738_v23 = vpop.f32.mrb[5].mxu0 }
 0x25b   : > { %v994_v24 = vpop.f32.mrb[6].mxu0 }
 0x25c   : > { %v1014_v26 = vadd.f32 %v1012_v22, %v1010_v21  ;;  %v1013_v27 = vmul.f32 %v1001_v6, %v994_v24  ;;  %v2739_v28 = vpop.f32.mrb[7].mxu0 }
 0x25e   : > { %v1015_v29 = vadd.f32 %v1013_v27, %v1011_v25 }
 0x260   : > { %v3688_v30 = vpack.c.bf16 %v1015_v29, %v1014_v26 }
 0x262   : > { %v1045_v31 = vsel %vm1040_vm1, %v3688_v30, 0 }
 0x263   : > { %2741 = vmatpush3.bf16.xpose.msra.mxu1 %v1045_v31 }
 0x264   : > { %2746 = vmatprep.subr.bf16.mxu1 %v3315_v39 }
 0x26a   : > { %2743 = vmatmul.mubr.msk.bf16.vlgmr.msra.gmra.mrb[4].mxu1 %vm1040_vm1, %v3686_v19 }
 0x26b   : > { %2747 = vmatpush3.bf16.msra.mxu1 %v3684_v11  ;;  %2748 = vmatprep.mubr.msk.bf16.mxu1 %vm3316_vm0, %v3315_v39 }
 0x26c   : > { %2752 = vmatprep.subr.bf16.mxu1 %v3315_v39 }
 0x33d   : > { %v1081_v34 = vpop.f32.mrb[4].mxu1 }
 0x33e   : > { %v1082_v36 = vadd.f32 %v1081_v34, %v3702_v32  ;;  %v2744_v37 = vpop.f32.mrb[5].mxu1 }
 0x33f   : > { %v1084_v38 = vpop.f32.mrb[6].mxu1 }
 0x340   : > { %v1085_v40 = vadd.f32 %v1084_v38, %v3707_v35  ;;  %v2745_v41 = vpop.f32.mrb[7].mxu1  ;;  %v1089_v42 = vsel %vm1088_vm2, %v1082_v36, -inf  ;;  %v2972_v38 = vld [vmem:[%s3749_s23 + $0x18] sm:$0xff]  }
 0x341   : > { %1090 = vmax.xlane.f32.xlu1 %v1089_v42 }
 0x342   : > { %v1092_v43 = vsel %vm1088_vm2, %v1085_v40, -inf }
 0x345   : > { %1093 = vmax.xlane.f32.xlu1 %v1092_v43  ;;  %v2973_v43 = vld [vmem:[%s3749_s23] sm:$0xff]  }
 0x3ce   : > { %v1091_v44 = vpop.xlane.xlu1 %1090 }
 0x3cf   : > { %v1095_v45 = vsub.f32 %v1082_v36, %v1091_v44  ;;  %v2971_v36 = vld [vmem:[%s3749_s23 + $0x10] sm:$0xff]  }
 0x3d1   : > { %v1097_v46 = vmul.f32 1.442695, %v1095_v45 }
 0x3d2   : > { %v1094_v47 = vpop.xlane.xlu1 %1093 }
 0x3d3   : > { %3047 = vpow2.f32 %v1097_v46  ;;  %v1096_v48 = vsub.f32 %v1085_v40, %v1094_v47  ;;  %v2974_v46 = vld [vmem:[%s3749_s23 + $0x8] sm:$0xff]  }
 0x3d5   : > { %v1099_v49 = vmul.f32 1.442695, %v1096_v48 }
 0x3d7   : > { %3049 = vpow2.f32 %v1099_v49 }
 0x3dd   : > { %v3048_v50 = vpop.eup %3047 }
 0x3de   : > { %v1101_v51 = vsel %vm1088_vm2, %v3048_v50, 0.0 }
 0x3df   : > { %1102 = vadd.xlane.f32.xlu0 %v1101_v51 }
 0x3e1   : > { %v3050_v52 = vpop.eup %3049 }
 0x3e2   : > { %v1104_v53 = vsel %vm1088_vm2, %v3050_v52, 0.0 }
 0x3e3   : > { %1105 = vadd.xlane.f32.xlu1 %v1104_v53 }
 0x3f4   : > { %1158 = vrot.lane.b32.xlu1 %v3686_v19, %s3317_s18 }
 0x3f5   : > { %1161 = vrot.lane.b32.xlu0 %v3688_v30, %s3317_s18 }
 0x46c   : > { %v1103_v54 = vpop.xlane.xlu0 %1102 }
 0x46d   : > { %3051 = vrcp.f32 %v1103_v54 }
 0x470   : > { %v1106_v55 = vpop.xlane.xlu1 %1105  ;;  %v1162_v60 = vpop.permute.xlu0 %1161 }
 0x471   : > { %3053 = vrcp.f32 %v1106_v55  ;;  %v1167_v62 = vsel %vm1040_vm1, %v1162_v60, 0 }
 0x474   : > { %v1159_v63 = vpop.permute.xlu1 %1158 }
 0x477   : > { %v3052_v56 = vpop.eup %3051 }
 0x478   : > { %v1109_v58 = vmul.f32 %v3052_v56, %v3048_v50 }
 0x47b   : > { %v3054_v57 = vpop.eup %3053 }
 0x47c   : > { %v1110_v59 = vmul.f32 %v3054_v57, %v3050_v52 }
 0x47e   : > { %v1111_v61 = vpack.c.bf16 %v1110_v59, %v1109_v58 }
 0x480   : > { %2749 = vmatmul.mubr.msk.bf16.vlgmr.msra.gmra.mrb[8].mxu1 %vm1088_vm2, %v1111_v61 }
 0x481   : > { %2753 = vmatpush3.bf16.xpose.msra.mxu1 %v1167_v62  ;;  %2754 = vmatprep.mubr.msk.bf16.mxu1 %vm3316_vm0, %v3315_v39 }
 0x482   : > { %2758 = vmatprep.subr.bf16.mxu1 %v3315_v39 }
 0x488   : > { %2755 = vmatmul.mubr.msk.bf16.vlgmr.msra.gmra.mrb[12].mxu1 %vm1040_vm1, %v1159_v63 }
 0x489   : > { %2760 = vmatprep.mubr.msk.bf16.mxu1 %vm3316_vm0, %v3315_v39 }
 0x553   : > { %v3727_v0 = vpop.f32.mrb[8].mxu1 }
 0x554   : > { %v2750_v1 = vpop.f32.mrb[9].mxu1 }
 0x555   : > { %v3729_v2 = vpop.f32.mrb[10].mxu1 }
 0x556   : > { %v1156_v3 = vpack.c.bf16 %v3729_v2, %v3727_v0  ;;  %v2751_v4 = vpop.f32.mrb[11].mxu1 }
 0x55b   : > { %v1203_v5 = vpop.f32.mrb[12].mxu1 }
 0x55c   : > { %v1204_v6 = vadd.f32 %v1203_v5, %v3702_v32  ;;  %v2756_v7 = vpop.f32.mrb[13].mxu1 }
 0x55d   : > { %v1206_v8 = vpop.f32.mrb[14].mxu1 }
 0x55e   : > { %v1207_v9 = vadd.f32 %v1206_v8, %v3707_v35  ;;  %v2757_v10 = vpop.f32.mrb[15].mxu1  ;;  %v1210_v12 = vsel %vm1088_vm2, %v1204_v6, -inf }
 0x55f   : > { %1211 = vmax.xlane.f32.xlu1 %v1210_v12 }
 0x560   : > { %v1213_v13 = vsel %vm1088_vm2, %v1207_v9, -inf }
 0x561   : > { %1214 = vmax.xlane.f32.xlu0 %v1213_v13 }
 0x5ec   : > { %v1212_v14 = vpop.xlane.xlu1 %1211 }
 0x5ed   : > { %v1216_v15 = vsub.f32 %v1204_v6, %v1212_v14 }
 0x5ee   : > { %v1215_v16 = vpop.xlane.xlu0 %1214 }
 0x5ef   : > { %v1218_v17 = vmul.f32 1.442695, %v1216_v15  ;;  %v1217_v18 = vsub.f32 %v1207_v9, %v1215_v16  ;;  %v2975_v15 = vld [vmem:[%s3749_s23 + $0x20] sm:$0xff]  }
 0x5f0   : > { %2793 = vmatpush3.bf16.msra.mxu0 %v2975_v15 }
 0x5f1   : > { %3055 = vpow2.f32 %v1218_v17  ;;  %v1220_v20 = vmul.f32 1.442695, %v1217_v18  ;;  %2794 = vmatprep.subr.bf16.mxu0 %v3315_v39 }
 0x5f3   : > { %3057 = vpow2.f32 %v1220_v20 }
 0x5fb   : > { %v3056_v21 = vpop.eup %3055 }
 0x5fc   : > { %v1222_v22 = vsel %vm1088_vm2, %v3056_v21, 0.0 }
 0x5fd   : > { %v3058_v23 = vpop.eup %3057  ;;  %1223 = vadd.xlane.f32.xlu0 %v1222_v22 }
 0x5fe   : > { %v1225_v24 = vsel %vm1088_vm2, %v3058_v23, 0.0 }
 0x5ff   : > { %1226 = vadd.xlane.f32.xlu1 %v1225_v24 }
 0x610   : > { %1396 = vrot.lane.b32.xlu1 %v3688_v30, %s3318_s20 }
 0x613   : > { %1234 = vrot.lane.b32.xlu0 %v3684_v11, %s3317_s18 }
 0x614   : > { %1394 = vrot.lane.b32.xlu1 %v3686_v19, %s3318_s20 }
 0x68a   : > { %v1224_v25 = vpop.xlane.xlu0 %1223 }
 0x68b   : > { %3059 = vrcp.f32 %v1224_v25 }
 0x68c   : > { %v1227_v26 = vpop.xlane.xlu1 %1226 }
 0x68d   : > { %3061 = vrcp.f32 %v1227_v26  ;;  %v2976_v26 = vld [vmem:[%s3749_s23 + $0x28] sm:$0xff]  }
 0x68e   : > { %v1235_v27 = vpop.permute.xlu0 %1234  ;;  %2795 = vmatpush3.bf16.msra.mxu0 %v2976_v26 }
 0x68f   : > { %2759 = vmatpush3.bf16.msra.mxu1 %v1235_v27  ;;  %2806 = vmatprep.subr.bf16.mxu0 %v3315_v39 }
 0x690   : > { %2764 = vmatprep.subr.bf16.mxu1 %v3315_v39  ;;  %v1397_v47 = vpop.permute.xlu1 %1396 }
 0x691   : > { %v1402_v48 = vsel %vm1040_vm1, %v1397_v47, 0 }
 0x694   : > { %v1395_v49 = vpop.permute.xlu1 %1394 }
 0x695   : > { %v3060_v28 = vpop.eup %3059 }
 0x696   : > { %v1230_v31 = vmul.f32 %v3060_v28, %v3056_v21 }
 0x697   : > { %v3062_v29 = vpop.eup %3061 }
 0x698   : > { %v1231_v34 = vmul.f32 %v3062_v29, %v3058_v23 }
 0x69a   : > { %v1232_v37 = vpack.c.bf16 %v1231_v34, %v1230_v31 }
 0x69c   : > { %2761 = vmatmul.mubr.msk.bf16.vlgmr.msra.gmra.mrb[16].mxu1 %vm1088_vm2, %v1232_v37 }
 0x69d   : > { %2765 = vmatpush3.bf16.msra.mxu1 %v2971_v36  ;;  %2768 = vmatprep.mubr.msk.bf16.mxu1 %vm3316_vm0, %v3315_v39 }
 0x69e   : > { %2766 = vmatprep.subr.bf16.mxu1 %v3315_v39 }
 0x6a1   : > { %2767 = vmatpush3.bf16.msra.mxu1 %v2972_v38 }
 0x6a2   : > { %2772 = vmatprep.subr.bf16.mxu1 %v3315_v39 }
 0x76f   : > { %v1274_v40 = vpop.f32.mrb[16].mxu1 }
 0x770   : > { %v2762_v41 = vpop.f32.mrb[17].mxu1 }
 0x771   : > { %v1277_v42 = vpop.f32.mrb[18].mxu1 }
 0x772   : > { %v1281_v44 = vpack.c.bf16 %v1277_v42, %v1274_v40  ;;  %v2763_v45 = vpop.f32.mrb[19].mxu1 }
 0x774   : > { %2769 = vmatmul.mubr.msk.bf16.vlgmr.msra.gmra.mrb[20].mxu1 %vm1040_vm1, %v1281_v44 }
 0x775   : > { %2773 = vmatpush3.bf16.msra.mxu1 %v2973_v43  ;;  %2776 = vmatprep.mubr.msk.bf16.mxu1 %vm3316_vm0, %v3315_v39 }
 0x776   : > { %2774 = vmatprep.subr.bf16.mxu1 %v3315_v39 }
 0x779   : > { %2775 = vmatpush3.bf16.msra.mxu1 %v2974_v46 }
 0x77a   : > { %2780 = vmatprep.subr.bf16.mxu1 %v3315_v39 }
 0x77c   : > { %2777 = vmatmul.mubr.msk.bf16.vlgmr.msra.gmra.mrb[24].mxu1 %vm1040_vm1, %v1156_v3 }
 0x77d   : > { %2782 = vmatprep.mubr.msk.bf16.mxu1 %vm3316_vm0, %v3315_v39 }
 0x782   : > { %2781 = vmatpush3.bf16.xpose.msra.mxu1 %v1402_v48 }
 0x783   : > { %2786 = vmatprep.subr.bf16.mxu1 %v3315_v39 }
 0x789   : > { %2783 = vmatmul.mubr.msk.bf16.vlgmr.msra.gmra.mrb[28].mxu1 %vm1040_vm1, %v1395_v49 }
 0x78a   : > { %2788 = vmatprep.mubr.msk.bf16.mxu1 %vm3316_vm0, %v3315_v39 }
 0x847   : > { %v1331_v50 = vpop.f32.mrb[20].mxu1 }
 0x848   : > { %v2770_v51 = vpop.f32.mrb[21].mxu1 }
 0x849   : > { %v1334_v52 = vpop.f32.mrb[22].mxu1 }
 0x84a   : > { %v2771_v53 = vpop.f32.mrb[23].mxu1 }
 0x84b   : > { %v2977_v53 = vld [vmem:[%s3749_s23 + $0x30] sm:$0xff]  }
 0x84f   : > { %v1387_v54 = vpop.f32.mrb[24].mxu1 }
 0x850   : > { %v3777_v55 = vadd.f32 %v1387_v54, %v1331_v50  ;;  %v2778_v56 = vpop.f32.mrb[25].mxu1 }
 0x851   : > { %v1390_v57 = vpop.f32.mrb[26].mxu1 }
 0x852   : > { %v3779_v58 = vadd.f32 %v1390_v57, %v1334_v52  ;;  %v2779_v59 = vpop.f32.mrb[27].mxu1 }
 0x85c   : > { %v1438_v60 = vpop.f32.mrb[28].mxu1 }
 0x85d   : > { %v1439_v61 = vadd.f32 %v1438_v60, %v3702_v32  ;;  %v2784_v62 = vpop.f32.mrb[29].mxu1 }
 0x85e   : > { %v1441_v63 = vpop.f32.mrb[30].mxu1 }
 0x85f   : > { %v1442_v0 = vadd.f32 %v1441_v63, %v3707_v35  ;;  %v2785_v1 = vpop.f32.mrb[31].mxu1  ;;  %v1445_v2 = vsel %vm1088_vm2, %v1439_v61, -inf }
 0x860   : > { %1446 = vmax.xlane.f32.xlu1 %v1445_v2 }
 0x861   : > { %v1448_v3 = vsel %vm1088_vm2, %v1442_v0, -inf }
 0x862   : > { %1449 = vmax.xlane.f32.xlu0 %v1448_v3 }
 0x871   : > { %1468 = vrot.lane.b32.xlu1 %v3684_v11, %s3318_s20 }
 0x875   : > { %1574 = vrot.lane.b32.xlu1 %v3686_v19, %s3319_s19 }
 0x8ed   : > { %v1447_v4 = vpop.xlane.xlu1 %1446 }
 0x8ee   : > { %v1451_v5 = vsub.f32 %v1439_v61, %v1447_v4 }
 0x8ef   : > { %v1450_v6 = vpop.xlane.xlu0 %1449 }
 0x8f0   : > { %v1453_v7 = vmul.f32 1.442695, %v1451_v5  ;;  %v1452_v8 = vsub.f32 %v1442_v0, %v1450_v6 }
 0x8f1   : > { %v1469_v9 = vpop.permute.xlu1 %1468 }
 0x8f2   : > { %3063 = vpow2.f32 %v1453_v7  ;;  %v1455_v10 = vmul.f32 1.442695, %v1452_v8  ;;  %2787 = vmatpush3.bf16.msra.mxu1 %v1469_v9  ;;  %v2979_v8 = vld [vmem:[%s3827_s12] ss:$16 sps:$4 sm:$0xff]   ;;  %v2981_v9 = vld [vmem:[%s3827_s12 + $0x4] ss:$16 sps:$4 sm:$0xff]  }
 0x8f3   : > { %2800 = vmatprep.subr.bf16.mxu1 %v3315_v39 }
 0x8f4   : > { %3065 = vpow2.f32 %v1455_v10  ;;  %v2982_v10 = vld [vmem:[%s3827_s12 + $0x8] ss:$16 sps:$4 sm:$0xff]  }
 0x8fc   : > { %v3064_v12 = vpop.eup %3063 }
 0x8fd   : > { %v1457_v13 = vsel %vm1088_vm2, %v3064_v12, 0.0 }
 0x8fe   : > { %v3066_v14 = vpop.eup %3065  ;;  %1458 = vadd.xlane.f32.xlu0 %v1457_v13  ;;  %v2985_v13 = vld [vmem:[%s3827_s12 + $0x20] ss:$16 sps:$4 sm:$0xff]  }
 0x8ff   : > { %v1460_v19 = vsel %vm1088_vm2, %v3066_v14, 0.0 }
 0x902   : > { %1461 = vadd.xlane.f32.xlu0 %v1460_v19  ;;  %v2990_v19 = vld [vmem:[%s3827_s12 + $0x2c] ss:$16 sps:$4 sm:$0xff]  }
 0x918   : > { %1576 = vrot.lane.b32.xlu0 %v3688_v30, %s3319_s19  ;;  %v1575_v30 = vpop.permute.xlu1 %1574 }
 0x98b   : > { %v1459_v16 = vpop.xlane.xlu0 %1458 }
 0x98c   : > { %3067 = vrcp.f32 %v1459_v16 }
 0x98f   : > { %v1462_v17 = vpop.xlane.xlu0 %1461 }
 0x990   : > { %3069 = vrcp.f32 %v1462_v17 }
 0x993   : > { %v1577_v23 = vpop.permute.xlu0 %1576 }
 0x994   : > { %v1582_v25 = vsel %vm1040_vm1, %v1577_v23, 0 }
 0x996   : > { %v3068_v18 = vpop.eup %3067 }
 0x997   : > { %v1465_v21 = vmul.f32 %v3068_v18, %v3064_v12  ;;  %v2984_v12 = vld [vmem:[%s3827_s12 + $0xc] ss:$16 sps:$4 sm:$0xff]  }
 0x99a   : > { %v3070_v20 = vpop.eup %3069 }
 0x99b   : > { %v1466_v22 = vmul.f32 %v3070_v20, %v3066_v14  ;;  %v2987_v14 = vld [vmem:[%s3827_s12 + $0x24] ss:$16 sps:$4 sm:$0xff]  }
 0x99c   : > { %v3099_v20 = vld [vmem:[%s3951_s16] sm:$0xff] }
 0x99d   : > { %v1467_v24 = vpack.c.bf16 %v1466_v22, %v1465_v21 }
 0x99f   : > { %2789 = vmatmul.mubr.msk.bf16.vlgmr.msra.gmra.mrb[32].mxu1 %vm1088_vm2, %v1467_v24  ;;  %v3100_v24 = vld [vmem:[%s3951_s16 + $0x8] sm:$0xff] }
 0x9a0   : > { %2801 = vmatpush3.bf16.xpose.msra.mxu1 %v1582_v25  ;;  %2802 = vmatprep.mubr.msk.bf16.mxu1 %vm3316_vm0, %v3315_v39 }
 0x9a1   : > { %2812 = vmatprep.subr.bf16.mxu1 %v3315_v39 }
 0x9a7   : > { %2803 = vmatmul.mubr.msk.bf16.vlgmr.msra.gmra.mrb[36].mxu1 %vm1040_vm1, %v1575_v30 }
 0x9a8   : > { %2816 = vmatprep.mubr.msk.bf16.mxu1 %vm3316_vm0, %v3315_v39  ;;  %2813 = vmatpush3.bf16.msra.mxu1 %v2977_v53  ;;  %v3024_v53 = vld [vmem:[%s3827_s12 + $0xe8] ss:$16 sps:$4 sm:$0xff]  }
 0x9a9   : > { %2814 = vmatprep.subr.bf16.mxu1 %v3315_v39 }
 0xa72   : > { %v1508_v27 = vpop.f32.mrb[32].mxu1 }
 0xa73   : > { %v2790_v28 = vpop.f32.mrb[33].mxu1 }
 0xa74   : > { %v1511_v29 = vpop.f32.mrb[34].mxu1  ;;  %v2996_v28 = vld [vmem:[%s3827_s12 + $0x4c] ss:$16 sps:$4 sm:$0xff]  }
 0xa75   : > { %v1515_v31 = vpack.c.bf16 %v1511_v29, %v1508_v27  ;;  %v2791_v34 = vpop.f32.mrb[35].mxu1  ;;  %v2993_v27 = vld [vmem:[%s3827_s12 + $0x44] ss:$16 sps:$4 sm:$0xff]   ;;  %v2991_v29 = vld [vmem:[%s3827_s12 + $0x40] ss:$16 sps:$4 sm:$0xff]  }
 0xa76   : > { %v2999_v34 = vld [vmem:[%s3827_s12 + $0x64] ss:$16 sps:$4 sm:$0xff]  }
 0xa77   : > { %2797 = vmatmul.mubr.msk.bf16.vlgmr.msra.gmra.mrb[8].mxu0 %vm1040_vm1, %v1515_v31  ;;  %v2994_v31 = vld [vmem:[%s3827_s12 + $0x48] ss:$16 sps:$4 sm:$0xff]  }
 0xa78   : > { %2808 = vmatprep.mubr.msk.bf16.mxu0 %vm3316_vm0, %v3315_v39 }
 0xa7a   : > { %v1618_v36 = vpop.f32.mrb[36].mxu1 }
 0xa7b   : > { %v1619_v37 = vadd.f32 %v1618_v36, %v3702_v32  ;;  %v2804_v38 = vpop.f32.mrb[37].mxu1  ;;  %v3002_v36 = vld [vmem:[%s3827_s12 + $0x6c] ss:$16 sps:$4 sm:$0xff]  }
 0xa7c   : > { %v1621_v40 = vpop.f32.mrb[38].mxu1  ;;  %v3000_v38 = vld [vmem:[%s3827_s12 + $0x68] ss:$16 sps:$4 sm:$0xff]  }
 0xa7d   : > { %v1622_v41 = vadd.f32 %v1621_v40, %v3707_v35  ;;  %v2805_v42 = vpop.f32.mrb[39].mxu1  ;;  %v1625_v43 = vsel %vm1088_vm2, %v1619_v37, -inf  ;;  %v3003_v40 = vld [vmem:[%s3827_s12 + $0x80] ss:$16 sps:$4 sm:$0xff]  }
 0xa7e   : > { %1626 = vmax.xlane.f32.xlu1 %v1625_v43  ;;  %v3006_v42 = vld [vmem:[%s3827_s12 + $0x88] ss:$16 sps:$4 sm:$0xff]   ;;  %v3008_v43 = vld [vmem:[%s3827_s12 + $0x8c] ss:$16 sps:$4 sm:$0xff]  }
 0xa7f   : > { %v1628_v44 = vsel %vm1088_vm2, %v1622_v41, -inf }
 0xa80   : > { %1629 = vmax.xlane.f32.xlu0 %v1628_v44  ;;  %v3011_v44 = vld [vmem:[%s3827_s12 + $0xa4] ss:$16 sps:$4 sm:$0xff]  }
 0xb0b   : > { %v1627_v45 = vpop.xlane.xlu1 %1626 }
 0xb0c   : > { %v1631_v46 = vsub.f32 %v1619_v37, %v1627_v45  ;;  %v2997_v37 = vld [vmem:[%s3827_s12 + $0x60] ss:$16 sps:$4 sm:$0xff]   ;;  %v3014_v45 = vld [vmem:[%s3827_s12 + $0xac] ss:$16 sps:$4 sm:$0xff]  }
 0xb0d   : > { %v1630_v47 = vpop.xlane.xlu0 %1629 }
 0xb0e   : > { %v1633_v48 = vmul.f32 1.442695, %v1631_v46  ;;  %v1632_v49 = vsub.f32 %v1622_v41, %v1630_v47  ;;  %v3005_v41 = vld [vmem:[%s3827_s12 + $0x84] ss:$16 sps:$4 sm:$0xff]   ;;  %v3009_v46 = vld [vmem:[%s3827_s12 + $0xa0] ss:$16 sps:$4 sm:$0xff]  }
 0xb0f   : > { %v3012_v47 = vld [vmem:[%s3827_s12 + $0xa8] ss:$16 sps:$4 sm:$0xff]  }
 0xb10   : > { %3071 = vpow2.f32 %v1633_v48  ;;  %v1635_v50 = vmul.f32 1.442695, %v1632_v49  ;;  %v3017_v48 = vld [vmem:[%s3827_s12 + $0xc4] ss:$16 sps:$4 sm:$0xff]   ;;  %v3020_v49 = vld [vmem:[%s3827_s12 + $0xcc] ss:$16 sps:$4 sm:$0xff]  }
 0xb12   : > { %3073 = vpow2.f32 %v1635_v50  ;;  %v3015_v50 = vld [vmem:[%s3827_s12 + $0xc0] ss:$16 sps:$4 sm:$0xff]  }
 0xb1a   : > { %v3072_v32 = vpop.eup %3071 }
 0xb1b   : > { %v1637_v51 = vsel %vm1088_vm2, %v3072_v32, 0.0 }
 0xb1c   : > { %v3074_v35 = vpop.eup %3073  ;;  %1638 = vadd.xlane.f32.xlu0 %v1637_v51  ;;  %v3023_v51 = vld [vmem:[%s3827_s12 + $0xe4] ss:$16 sps:$4 sm:$0xff]  }
 0xb1d   : > { %v1640_v52 = vsel %vm1088_vm2, %v3074_v35, 0.0 }
 0xb1e   : > { %1641 = vadd.xlane.f32.xlu1 %v1640_v52  ;;  %v3021_v52 = vld [vmem:[%s3827_s12 + $0xe0] ss:$16 sps:$4 sm:$0xff]  }
 0xb32   : > { %1648 = vrot.lane.b32.xlu0 %v3684_v11, %s3319_s19 }
 0xb4a   : > { %v1565_v54 = vpop.f32.mrb[8].mxu0 }
 0xb4b   : > { %v1572_v56 = vadd.f32 %v1565_v54, %v3777_v55  ;;  %v2798_v57 = vpop.f32.mrb[9].mxu0  ;;  %v2978_v55 = vld [vmem:[%s3749_s23 + $0x38] sm:$0xff]  }
 0xb4c   : > { %v1568_v59 = vpop.f32.mrb[10].mxu0  ;;  %2815 = vmatpush3.bf16.msra.mxu1 %v2978_v55  ;;  %v3027_v55 = vld [vmem:[%s2098_s2 + $0x40] sm:$0xff]  }
 0xb4d   : > { %v1573_v60 = vadd.f32 %v1568_v59, %v3779_v58  ;;  %v2799_v61 = vpop.f32.mrb[11].mxu0  ;;  %2019 = vmatprep.subr.bf16.mxu1 %v2984_v12  ;;  %v3036_v12 = vld [vmem:[%s2098_s2 + $0x20] sm:$0xff]  }
 0xba9   : > { %v1639_v62 = vpop.xlane.xlu0 %1638 }
 0xbaa   : > { %3075 = vrcp.f32 %v1639_v62 }
 0xbab   : > { %v1642_v63 = vpop.xlane.xlu1 %1641 }
 0xbac   : > { %3077 = vrcp.f32 %v1642_v63 }
 0xbad   : > { %v1649_v0 = vpop.permute.xlu0 %1648 }
 0xbae   : > { %2807 = vmatpush3.bf16.msra.mxu0 %v1649_v0 }
 0xbaf   : > { %1976 = vmatprep.subr.bf16.mxu0 %v2981_v9  ;;  %v3034_v9 = vld [vmem:[%s2098_s2 + $0x18] sm:$0xff]  }
 0xbb4   : > { %v3076_v11 = vpop.eup %3075 }
 0xbb5   : > { %v1645_v2 = vmul.f32 %v3076_v11, %v3072_v32  ;;  %v3018_v32 = vld [vmem:[%s3827_s12 + $0xc8] ss:$16 sps:$4 sm:$0xff]   ;;  %v2655_v11 = vld [vmem:[%s2652_s30 - $0x1] ss:$0 sm:$0xff] }
 0xbb6   : > { %v3078_v1 = vpop.eup %3077 }
 0xbb7   : > { %v1646_v39 = vmul.f32 %v3078_v1, %v3074_v35  ;;  %v3026_v35 = vld [vmem:[%s3827_s12 + $0xec] ss:$16 sps:$4 sm:$0xff]  }
 0xbb9   : > { %v1647_v3 = vpack.c.bf16 %v1646_v39, %v1645_v2 }
 0xbbb   : > { %2809 = vmatmul.mubr.msk.bf16.vlgmr.msra.gmra.mrb[12].mxu0 %vm1088_vm2, %v1647_v3 }
 0xbbc   : > { %2008 = vmatprep.mubr.bf16.mxu0 %v3314_v33  ;;  %1977 = vmatpush1.bf16.msra.mxu0 %v2979_v8  ;;  %v3033_v8 = vld [vmem:[%s2098_s2 + $0x58] sm:$0xff]  }
 0xbbd   : > { %1978 = vmatprep.subr.bf16.mxu0 %v2987_v14  ;;  %v3038_v14 = vld [vmem:[%s2098_s2 + $0x28] sm:$0xff]  }
 0xbc0   : > { %1979 = vmatpush1.bf16.msra.mxu0 %v2985_v13  ;;  %v3037_v13 = vld [vmem:[%s2098_s2 + $0x68] sm:$0xff]  }
 0xbc1   : > { %1980 = vmatprep.subr.bf16.mxu0 %v2993_v27 }
 0xbc4   : > { %1981 = vmatpush1.bf16.msra.mxu0 %v2991_v29 }
 0xbc5   : > { %1982 = vmatprep.subr.bf16.mxu0 %v2999_v34 }
 0xbc8   : > { %1983 = vmatpush1.bf16.msra.mxu0 %v2997_v37 }
 0xbc9   : > { %1984 = vmatprep.subr.bf16.mxu0 %v3005_v41 }
 0xbcc   : > { %1985 = vmatpush1.bf16.msra.mxu0 %v3003_v40 }
 0xbcd   : > { %1986 = vmatprep.subr.bf16.mxu0 %v3011_v44 }
 0xbd0   : > { %1987 = vmatpush1.bf16.msra.mxu0 %v3009_v46 }
 0xbd1   : > { %1988 = vmatprep.subr.bf16.mxu0 %v3017_v48 }
 0xbd4   : > { %1989 = vmatpush1.bf16.msra.mxu0 %v3015_v50 }
 0xbd5   : > { %1990 = vmatprep.subr.bf16.mxu0 %v3023_v51 }
 0xbd8   : > { %1991 = vmatpush1.bf16.msra.mxu0 %v3021_v52 }
 0xbd9   : > { %2695 = vmatprep.subr.bf16.mxu0 %v3027_v55 }
 0xc8e   : > { %v1688_v58 = vpop.f32.mrb[12].mxu0 }
 0xc8f   : > { %v2810_v4 = vpop.f32.mrb[13].mxu0 }
 0xc90   : > { %v1691_v5 = vpop.f32.mrb[14].mxu0  ;;  %v3029_v4 = vld [vmem:[%s2098_s2 + $0x48] sm:$0xff]  }
 0xc91   : > { %v1695_v6 = vpack.c.bf16 %v1691_v5, %v1688_v58  ;;  %v2811_v7 = vpop.f32.mrb[15].mxu0  ;;  %v3028_v58 = vld [vmem:[%s2098_s2] sm:$0xff]   ;;  %v3030_v5 = vld [vmem:[%s2098_s2 + $0x8] sm:$0xff]  }
 0xc92   : > { %v3032_v7 = vld [vmem:[%s2098_s2 + $0x10] sm:$0xff]  }
 0xc93   : > { %2817 = vmatmul.mubr.msk.bf16.vlgmr.msra.gmra.mrb[40].mxu1 %vm1040_vm1, %v1695_v6  ;;  %v3031_v6 = vld [vmem:[%s2098_s2 + $0x50] sm:$0xff]  }
 0xc94   : > { %2051 = vmatprep.mubr.bf16.mxu1 %v3314_v33  ;;  %v2988_v33 = vld [vmem:[%s3827_s12 + $0x28] ss:$16 sps:$4 sm:$0xff]   ;;  %2020 = vmatpush1.bf16.msra.mxu1 %v2982_v10  ;;  %v3035_v10 = vld [vmem:[%s2098_s2 + $0x60] sm:$0xff]  }
 0xc95   : > { %2021 = vmatprep.subr.bf16.mxu1 %v2990_v19  ;;  %v3040_v19 = vld [vmem:[%s2098_s2 + $0x30] sm:$0xff]  }
 0xc98   : > { %2022 = vmatpush1.bf16.msra.mxu1 %v2988_v33  ;;  %v3039_v33 = vld [vmem:[%s2098_s2 + $0x70] sm:$0xff]  }
 0xc99   : > { %2023 = vmatprep.subr.bf16.mxu1 %v2996_v28 }
 0xc9c   : > { %2024 = vmatpush1.bf16.msra.mxu1 %v2994_v31 }
 0xc9d   : > { %2025 = vmatprep.subr.bf16.mxu1 %v3002_v36 }
 0xca0   : > { %2026 = vmatpush1.bf16.msra.mxu1 %v3000_v38 }
 0xca1   : > { %2027 = vmatprep.subr.bf16.mxu1 %v3008_v43 }
 0xca4   : > { %2028 = vmatpush1.bf16.msra.mxu1 %v3006_v42 }
 0xca5   : > { %2029 = vmatprep.subr.bf16.mxu1 %v3014_v45 }
 0xca8   : > { %2030 = vmatpush1.bf16.msra.mxu1 %v3012_v47 }
 0xca9   : > { %2031 = vmatprep.subr.bf16.mxu1 %v3020_v49 }
 0xcac   : > { %2032 = vmatpush1.bf16.msra.mxu1 %v3018_v32 }
 0xcad   : > { %2033 = vmatprep.subr.bf16.mxu1 %v3026_v35 }
 0xcb0   : > { %2034 = vmatpush1.bf16.msra.mxu1 %v3024_v53 }
 0xd66   : > { %v1745_v15 = vpop.f32.mrb[40].mxu1 }
 0xd67   : > { %v1752_v16 = vadd.f32 %v1745_v15, %v1572_v56  ;;  %v2818_v17 = vpop.f32.mrb[41].mxu1  ;;  %v3041_v15 = vld [vmem:[%s2098_s2 + $0x78] sm:$0xff]  }
 0xd68   : > { %v1748_v18 = vpop.f32.mrb[42].mxu1 }
 0xd69   : > { %v3840_v21 = vadd.f32 %v3099_v20, %v1752_v16  ;;  %v1753_v22 = vadd.f32 %v1748_v18, %v1573_v60  ;;  %v2819_v23 = vpop.f32.mrb[43].mxu1  ;;  %v3042_v16 = vld [vmem:[%s2098_s2 + $0x38] sm:$0xff]  }
 0xd6b   : > { %v3845_v25 = vadd.f32 %v3100_v24, %v1753_v22  ;;  %v1758_v30 = vmul.f32 %v3840_v21, %v3840_v21 }
 0xd6d   : > { %1760 = vadd.xlane.f32.xlu1 %v1758_v30  ;;  %v1759_v26 = vmul.f32 %v3845_v25, %v3845_v25 }
 0xd71   : > { %1762 = vadd.xlane.f32.xlu1 %v1759_v26 }
 0xdfa   : > { %v1761_v54 = vpop.xlane.xlu1 %1760 }
 0xdfb   : > { %v1764_v56 = vmul.f32 0.0078125, %v1761_v54 }
 0xdfd   : > { %v1766_v57 = vadd.f32 1e-06, %v1764_v56 }
 0xdfe   : > { %v1763_v59 = vpop.xlane.xlu1 %1762 }
 0xdff   : > { %3079 = vrsqrt.f32 %v1766_v57  ;;  %v1765_v60 = vmul.f32 0.0078125, %v1763_v59 }
 0xe01   : > { %v1767_v61 = vadd.f32 1e-06, %v1765_v60 }
 0xe03   : > { %3081 = vrsqrt.f32 %v1767_v61 }
 0xe09   : > { %v3080_v62 = vpop.eup %3079 }
 0xe0a   : > { %v1770_v63 = vmul.f32 %v3080_v62, %v3840_v21 }
 0xe0c   : > { %v1778_v2 = vmul.f32 %v2655_v11, %v1770_v63 }
 0xe0d   : > { %v3082_v0 = vpop.eup %3081 }
 0xe0e   : > { %v1771_v1 = vmul.f32 %v3082_v0, %v3845_v25 }
 0xe10   : > { %v1779_v39 = vmul.f32 %v2655_v11, %v1771_v1 }
 0xe12   : > { %v1780_v3 = vpack.c.bf16 %v1779_v39, %v1778_v2 }
 0xe14   : > { %2009 = vmatmul.mubr.bf16.vlgmr.msra.gmra.mrb[16].mxu0 %v1780_v3  ;;  %2052 = vmatmul.mubr.bf16.vlgmr.msra.gmra.mrb[44].mxu1 %v1780_v3 }
 0xe15   : > { %2696 = vmatpush3.bf16.msra.mxu0 %v3028_v58 }
 0xe16   : > { %2697 = vmatprep.subr.bf16.mxu0 %v3029_v4 }
 0xe19   : > { %2698 = vmatpush3.bf16.msra.mxu0 %v3030_v5 }
 0xe1a   : > { %2699 = vmatprep.subr.bf16.mxu0 %v3031_v6 }
 0xe1d   : > { %2700 = vmatpush3.bf16.msra.mxu0 %v3032_v7 }
 0xe1e   : > { %2701 = vmatprep.subr.bf16.mxu0 %v3033_v8 }
 0xe21   : > { %2702 = vmatpush3.bf16.msra.mxu0 %v3034_v9 }
 0xe22   : > { %2703 = vmatprep.subr.bf16.mxu0 %v3035_v10 }
 0xe25   : > { %2704 = vmatpush3.bf16.msra.mxu0 %v3036_v12 }
 0xe26   : > { %2705 = vmatprep.subr.bf16.mxu0 %v3037_v13 }
 0xe29   : > { %2706 = vmatpush3.bf16.msra.mxu0 %v3038_v14 }
 0xe2a   : > { %2707 = vmatprep.subr.bf16.mxu0 %v3039_v33 }
 0xe2d   : > { %2708 = vmatpush3.bf16.msra.mxu0 %v3040_v19 }
 0xe2e   : > { %2709 = vmatprep.subr.bf16.mxu0 %v3041_v15 }
 0xe31   : > { %2710 = vmatpush3.bf16.msra.mxu0 %v3042_v16 }
 0xee7   : > { %v2010_v17 = vpop.f32.mrb[16].mxu0  ;;  %v2053_v18 = vpop.f32.mrb[44].mxu1 }
 0xee8   : > { %v2615_v20 = vmul.f32 -1.442695, %v2010_v17  ;;  %v2012_v22 = vpop.f32.mrb[17].mxu0  ;;  %v2055_v23 = vpop.f32.mrb[45].mxu1 }
 0xee9   : > { %v2616_v24 = vmul.f32 -1.442695, %v2012_v22  ;;  %v2014_v30 = vpop.f32.mrb[18].mxu0  ;;  %v2057_v26 = vpop.f32.mrb[46].mxu1 }
 0xeea   : > { %3083 = vpow2.f32 %v2615_v20  ;;  %v2617_v27 = vmul.f32 -1.442695, %v2014_v30  ;;  %v2016_v28 = vpop.f32.mrb[19].mxu0  ;;  %v2059_v29 = vpop.f32.mrb[47].mxu1 }
 0xeeb   : > { %3085 = vpow2.f32 %v2616_v24  ;;  %v2618_v31 = vmul.f32 -1.442695, %v2016_v28 }
 0xeec   : > { %3087 = vpow2.f32 %v2617_v27 }
 0xeed   : > { %3089 = vpow2.f32 %v2618_v31 }
 0xef4   : > { %v3084_v34 = vpop.eup %3083 }
 0xef5   : > { %v3086_v36 = vpop.eup %3085  ;;  %v2074_v37 = vadd.f32 1.0, %v3084_v34 }
 0xef6   : > { %v3088_v38 = vpop.eup %3087  ;;  %v2075_v40 = vadd.f32 1.0, %v3086_v36 }
 0xef7   : > { %v3090_v41 = vpop.eup %3089  ;;  %3091 = vrcp.f32 %v2074_v37  ;;  %v2076_v42 = vadd.f32 1.0, %v3088_v38 }
 0xef8   : > { %3093 = vrcp.f32 %v2075_v40  ;;  %v2077_v43 = vadd.f32 1.0, %v3090_v41 }
 0xef9   : > { %3095 = vrcp.f32 %v2076_v42 }
 0xefa   : > { %3097 = vrcp.f32 %v2077_v43 }
 0xf01   : > { %v3092_v44 = vpop.eup %3091 }
 0xf02   : > { %v3094_v45 = vpop.eup %3093  ;;  %v2086_v46 = vmul.f32 %v3092_v44, %v2010_v17 }
 0xf03   : > { %v3096_v47 = vpop.eup %3095  ;;  %v2087_v48 = vmul.f32 %v3094_v45, %v2012_v22 }
 0xf04   : > { %v3098_v49 = vpop.eup %3097  ;;  %v2090_v50 = vmul.f32 %v2086_v46, %v2053_v18  ;;  %v2088_v32 = vmul.f32 %v3096_v47, %v2014_v30 }
 0xf05   : > { %v2091_v51 = vmul.f32 %v2087_v48, %v2055_v23  ;;  %v2089_v35 = vmul.f32 %v3098_v49, %v2016_v28 }
 0xf06   : > { %v2092_v52 = vmul.f32 %v2088_v32, %v2057_v26 }
 0xf07   : > { %v2093_v53 = vmul.f32 %v2089_v35, %v2059_v29 }
 0xf08   : > { %v2094_v54 = vpack.c.bf16 %v2092_v52, %v2090_v50 }
 0xf09   : > { %v2095_v56 = vpack.c.bf16 %v2093_v53, %v2091_v51 }
 0xf0b   : > { %2259 = vmatprep.mubr.bf16.mxu0 %v2095_v56 }
 0xf0c   : > { %2260 = vmatmul.mubr.bf16.vlgmr.msra.gmra.mrb[20].mxu0 %v2094_v54 }
 0xfdf   : > { %v2711_v57 = vpop.f32.mrb[20].mxu0  ;;  %2273 = sbr.rel (%p2637_p7) target bundleno = 4072 (0xfe8), region = 116 }
 0xfe0   : > { %v2712_v59 = vpop.f32.mrb[21].mxu0 }
 0xfe1   : > { %v2713_v60 = vadd.f32 %v2712_v59, %v2711_v57  ;;  %v2714_v61 = vpop.f32.mrb[22].mxu0 }
 0xfe2   : > { %v2715_v62 = vpop.f32.mrb[23].mxu0 }
 0xfe3   : > { %v2268_v63 = vadd.f32 %v2713_v60, %v3840_v21  ;;  %v2716_v0 = vadd.f32 %v2715_v62, %v2714_v61 }
 0xfe5   : > { %v2269_v11 = vadd.f32 %v2716_v0, %v3845_v25  ;;  %2274 = vst [vmem:[%s3951_s16] sm:$0xff] (!%p2637_p7), %v2268_v63 }
 0xfe7   : > { %2275 = vst [vmem:[%s3951_s16 + $0x8] sm:$0xff] %v2269_v11 }
 0xfe8 PF: > { %p2638_p9 = scmp.ne.s32.totalorder %s3414_s24, 3 }
 0xfe9   : > { %v2281_v1 = vmul.f32 (!%p2638_p9), %v2268_v63, %v2268_v63  ;;  %v2282_v21 = vmul.f32 (!%p2638_p9), %v2269_v11, %v2269_v11  ;;  %v3101_v25 = vld [vmem:[%s3946_s11] sm:$0xff] (!%p2638_p9)   ;;  %v3320_v2 = vmov (!%p2638_p9), 0.0   ;;  %v3102_v39 = vld [vmem:[%s3946_s11 + $0x8] sm:$0xff] (!%p2638_p9)   ;;  %vm3321_vm3 = vmmov (!%p2638_p9), 0   ;;  %s3979_s17 = sld [smem:[#allocation18_spill]] (!%p2638_p9)  ;;  %s3980_s30 = sld [smem:[#allocation20_spill]] (!%p2638_p9) }
 0xfea   : > { %2279 = sbr.rel (%p2638_p9) target bundleno = 4619 (0x120b), region = 120  ;;  %2820 = vmatprep.subr.bf16.mxu0 (!%p2638_p9), %v3320_v2  ;;  %2824 = vmatprep.mubr.msk.bf16.mxu0 (!%p2638_p9), %vm3321_vm3, %v3320_v2  ;;  %v2639_v10 = vld [vmem:[%s3945_s10] ss:$0 sm:$0xff] (!%p2638_p9)  ;;  %s3981_s15 = sld [smem:[#allocation21_spill]] (!%p2638_p9)  ;;  %vm2385_vm4 = vcmask (!%p2638_p9), 64512   ;;  %vm2407_vm5 = vcmask (!%p2638_p9), 138240  }
 0xfeb   : > { %2283 = vadd.xlane.f32.xlu0 (!%p2638_p9), %v2281_v1  ;;  %2821 = vmatpush3.bf16.msra.mxu0 (!%p2638_p9), %v3101_v25  ;;  %s3982_s19 = sld [smem:[#allocation19_spill]] (!%p2638_p9)  ;;  %s3322_s12 = smov (!%p2638_p9), 8  }
 0xfec   : > { %2822 = vmatprep.subr.bf16.mxu0 (!%p2638_p9), %v3320_v2 }
 0xfef   : > { %2285 = vadd.xlane.f32.xlu0 (!%p2638_p9), %v2282_v21  ;;  %2823 = vmatpush3.bf16.msra.mxu0 (!%p2638_p9), %v3102_v39  ;;  %v2640_v19 = vld [vmem:[%s3979_s17] ss:$0 sm:$0xff] (!%p2638_p9)  ;;  %v2372_v23 = vld [vmem:[%s3980_s30 + $0x8] sm:$0xff] (!%p2638_p9) }
 0xff0   : > { %v2371_v16 = vld [vmem:[%s3980_s30] sm:$0xff] (!%p2638_p9)  ;;  %v2376_v27 = vld [vmem:[%s3981_s15 + $0x8] sm:$0xff] (!%p2638_p9) }
 0xff1   : > { %v2375_v20 = vld [vmem:[%s3981_s15] sm:$0xff]  ;;  %v2380_v34 = vld [vmem:[%s3982_s19 + $0x8] sm:$0xff] }
 0xff2   : > { %v2379_v28 = vld [vmem:[%s3982_s19] sm:$0xff] }
0x1078   : > { %v2284_v3 = vpop.xlane.xlu0 %2283 }
0x1079   : > { %v2287_v55 = vmul.f32 0.0078125, %v2284_v3 }
0x107b   : > { %v2289_v58 = vadd.f32 1e-06, %v2287_v55 }
0x107c   : > { %v2286_v4 = vpop.xlane.xlu0 %2285 }
0x107d   : > { %3103 = vrsqrt.f32 %v2289_v58  ;;  %v2288_v5 = vmul.f32 0.0078125, %v2286_v4 }
0x107f   : > { %v2290_v6 = vadd.f32 1e-06, %v2288_v5 }
0x1081   : > { %3105 = vrsqrt.f32 %v2290_v6 }
0x1087   : > { %v3104_v7 = vpop.eup %3103 }
0x1088   : > { %v2293_v8 = vmul.f32 %v3104_v7, %v2268_v63 }
0x108a   : > { %v2301_v13 = vmul.f32 %v2639_v10, %v2293_v8 }
0x108b   : > { %v3106_v9 = vpop.eup %3105 }
0x108c   : > { %v2294_v12 = vmul.f32 %v3106_v9, %v2269_v11 }
0x108e   : > { %v2302_v14 = vmul.f32 %v2639_v10, %v2294_v12 }
0x1090   : > { %v2303_v33 = vpack.c.bf16 %v2302_v14, %v2301_v13 }
0x1092   : > { %2825 = vmatmul.mubr.msk.bf16.vlgmr.msra.gmra.mrb[0].mxu0 %vm1040_vm1, %v2303_v33 }
0x1165   : > { %v2364_v15 = vpop.f32.mrb[0].mxu0 }
0x1166   : > { %v2365_v17 = vadd.f32 %v2640_v19, %v2364_v15  ;;  %v2826_v18 = vpop.f32.mrb[1].mxu0 }
0x1167   : > { %v2367_v22 = vpop.f32.mrb[2].mxu0 }
0x1168   : > { %v2373_v24 = vmul.f32 %v2371_v16, %v2365_v17  ;;  %v2368_v30 = vadd.f32 %v2640_v19, %v2367_v22  ;;  %v2827_v26 = vpop.f32.mrb[3].mxu0 }
0x116a   : > { %v2377_v29 = vadd.f32 %v2375_v20, %v2373_v24  ;;  %v2374_v31 = vmul.f32 %v2372_v23, %v2368_v30 }
0x116c   : > { %v2378_v36 = vadd.f32 %v2376_v27, %v2374_v31  ;;  %v2381_v37 = vsub.f32 %v2379_v28, %v2377_v29 }
0x116e   : > { %v2383_v38 = vmul.f32 %v2381_v37, %v2381_v37  ;;  %v2382_v40 = vsub.f32 %v2380_v34, %v2378_v36 }
0x1170   : > { %2397 = vrot.lane.b32.xlu0 %v2383_v38, %s3322_s12  ;;  %v2386_v41 = vsel %vm2385_vm4, %v2383_v38, 0.0  ;;  %v2384_v42 = vmul.f32 %v2382_v40, %v2382_v40 }
0x1171   : > { %2387 = vadd.xlane.f32.xlu1 %v2386_v41 }
0x1172   : > { %v2389_v43 = vsel %vm2385_vm4, %v2384_v42, 0.0 }
0x1175   : > { %2390 = vadd.xlane.f32.xlu1 %v2389_v43 }
0x1186   : > { %2399 = vrot.lane.b32.xlu1 %v2384_v42, %s3322_s12 }
0x11e2   : > { %v2398_v44 = vpop.permute.xlu0 %2397 }
0x11e3   : > { %v2403_v47 = vsel %vm2385_vm4, %v2377_v29, %v2398_v44 }
0x11fe   : > { %v2388_v45 = vpop.xlane.xlu1 %2387 }
0x11ff   : > { %v2393_v46 = vmul.f32 0.125, %v2388_v45 }
0x1201   : > { %v2405_v48 = vsel %vm1088_vm2, %v2403_v47, %v2393_v46 }
0x1202   : > { %v2408_v49 = vsel %vm2407_vm5, %v2405_v48, 0.0  ;;  %v2391_v50 = vpop.xlane.xlu1 %2390 }
0x1203   : > { %2410 = vst [vmem:[%s3951_s16] sm:$0xff] %v2408_v49  ;;  %v2394_v32 = vmul.f32 0.125, %v2391_v50 }
0x1206   : > { %v2400_v51 = vpop.permute.xlu1 %2399 }
0x1207   : > { %v2404_v35 = vsel %vm2385_vm4, %v2378_v36, %v2400_v51 }
0x1208   : > { %v2406_v52 = vsel %vm1088_vm2, %v2404_v35, %v2394_v32 }
0x1209   : > { %v2409_v53 = vsel %vm2407_vm5, %v2406_v52, 0.0 }
0x120a   : > { %2411 = vst [vmem:[%s3951_s16 + $0x8] sm:$0xff] %v2409_v53 }
0x120b PF: > { %s30_s21 = sadd.s32 1, %s3297_s21  }
0x120c   : > { %p27_p2 = scmp.ge.s32.totalorder %s30_s21, 6  }
0x120e   :  { %29 = sbr.rel (!%p27_p2) target bundleno = 11 (0xb), region = 150 }
0x1215   :  { %2423 = vsyncpa [#allocation3], 1 }
0x1216   :  { %2425 = vsyncpa [#allocation3 + $0x1], 1 }
0x1217   :  { %2426 = vsyncpa [#allocation5], 1 }
0x1218   :  { %2427 = vsyncpa [#allocation8], 1 }
0x1219   :  { %2428 = vsyncpa [#allocation11], 1 }

</bundles_post_ra>
